<compile_context>
chip_gen: v7x
topology: tpu7x:2x2x1
jax: 0.10.0
libtpu: 0.0.40
codegen_flags: <defaults>
</compile_context>

<pallas_src>
import jax
import jax.numpy as jnp
from jax import lax
from jax.experimental import pallas as pl
from jax.experimental.pallas import tpu as pltpu

_LANES = 128
_SUB = 8


def _round_up(x, m):
    return ((x + m - 1) // m) * m


def _make_nps_kernel(n_colors, valid_p, rows, strip, needs_mask):
    """Builds the kernel with the static configuration baked in."""
    tile_elems = rows * _LANES
    strip_elems = strip * _LANES
    n_strips = rows // strip

    def kernel(col_ref, adv_ref, out_ref):
        # col_ref: (n_colors*3,) f32 SMEM, flat [r0,g0,b0, r1,g1,b1, ...]
        # adv_ref: (3, 1, rows, 128) f32 VMEM tile of the flattened patch
        # out_ref: (1, 8, 128) f32 per-tile partial sum
        pid = pl.program_id(0)

        # Hoist the color-scalar reads out of the strip loop (JAX won't CSE them)
        # and fold the first epsilon into the color: (a + eps) - c == a - (c - eps).
        cols = [col_ref[i] - jnp.float32(1e-6) for i in range(3 * n_colors)]

        if needs_mask:
            # Loop-invariant local flat index of a strip (hoisted once per tile).
            row_i = lax.broadcasted_iota(jnp.int32, (strip, _LANES), 0)
            lane_i = lax.broadcasted_iota(jnp.int32, (strip, _LANES), 1)
            local_flat = row_i * _LANES + lane_i
            # int32 flat indexing: fine for any realistic patch (< 2^31 pixels).
            tile_base = pid * tile_elems

        def strip_body(s, acc):
            start = pl.multiple_of(s * strip, strip)
            a0 = adv_ref[0, 0, pl.ds(start, strip), :]      # (strip, 128)
            a1 = adv_ref[1, 0, pl.ds(start, strip), :]
            a2 = adv_ref[2, 0, pl.ds(start, strip), :]

            # Running minimum over colors of the *squared* distance (sqrt deferred).
            dmin2 = None
            for k in range(n_colors):
                d0 = a0 - cols[3 * k]
                d1 = a1 - cols[3 * k + 1]
                d2 = a2 - cols[3 * k + 2]
                dist2 = d0 * d0 + d1 * d1 + d2 * d2
                dmin2 = dist2 if dmin2 is None else jnp.minimum(dmin2, dist2)

            # Single epsilon add + single sqrt per pixel.
            dmin = jnp.sqrt(dmin2 + jnp.float32(1e-6))

            if needs_mask:
                thresh = valid_p - (tile_base + s * strip_elems)
                dmin = jnp.where(local_flat < thresh, dmin, jnp.float32(0.0))

            # Fold the strip rows into the (8, 128) accumulator with vreg-aligned
            # elementwise adds (no cross-lane work inside the loop).
            part = dmin[0:_SUB, :]
            for r in range(1, strip // _SUB):
                part = part + dmin[r * _SUB:(r + 1) * _SUB, :]
            return acc + part

        init = jnp.zeros((_SUB, _LANES), jnp.float32)
        if n_strips == 1:
            acc = strip_body(jnp.int32(0), init)
        else:
            acc = lax.fori_loop(0, n_strips, strip_body, init,
                                unroll=(n_strips <= 4))
        out_ref[0, :, :] = acc

    return kernel


def nps_score(adv_patch, printability_colors, *, rows_cap=1024):
    """adv_patch: (3, side, side) f32; printability_colors: (N, 3) f32 -> scalar f32."""
    c, s1, s2 = adv_patch.shape
    assert c == 3
    p = s1 * s2
    n = int(printability_colors.shape[0])
    inv_numel = 1.0 / float(c * p)

    # Lane-dense spatial tiling: (rows, 128) blocks over a 1-D grid.
    rows_needed = -(-p // _LANES)
    if rows_needed <= 32:
        rows = _round_up(rows_needed, _SUB)          # tiny patch: single small tile
    else:
        # Aim for >= 2 tiles (v7x megacore split), each at most rows_cap rows,
        # rows a multiple of the 32-row strip.  Tile = 3*rows*128*4 B (<= 1.5 MiB),
        # double-buffered well under the scoped-VMEM limit on v5e/v6e/v7x.
        want_tiles = max(2, -(-rows_needed // rows_cap))
        rows = _round_up(-(-rows_needed // want_tiles), 32)
    tile_elems = rows * _LANES
    n_tiles = -(-p // tile_elems)
    p_pad = n_tiles * tile_elems
    strip = min(32, rows)
    needs_mask = (p_pad != p)

    adv_flat = adv_patch.reshape(c, p).astype(jnp.float32)
    if needs_mask:
        adv_flat = jnp.pad(adv_flat, ((0, 0), (0, p_pad - p)))
    # (3, n_tiles, rows, 128): grid step i grabs tile i of every channel
    # (three contiguous chunks per step; no host-side transpose needed).
    adv_tiled = adv_flat.reshape(c, n_tiles, rows, _LANES)

    cols_flat = printability_colors.astype(jnp.float32).reshape(n * 3)

    kernel = _make_nps_kernel(
        n_colors=n, valid_p=p, rows=rows, strip=strip, needs_mask=needs_mask)

    partials = pl.pallas_call(
        kernel,
        out_shape=jax.ShapeDtypeStruct((n_tiles, _SUB, _LANES), jnp.float32),
        grid=(n_tiles,),
        in_specs=[
            pl.BlockSpec(memory_space=pltpu.MemorySpace.SMEM),            # colors
            pl.BlockSpec((c, 1, rows, _LANES), lambda i: (0, i, 0, 0)),   # patch tile
        ],
        out_specs=pl.BlockSpec((1, _SUB, _LANES), lambda i: (i, 0, 0)),
        compiler_params=pltpu.CompilerParams(
            dimension_semantics=("parallel",),
        ),
    )(cols_flat, adv_tiled)

    # Tiny final reduce over the per-tile (8,128) partials, then normalize.
    return jnp.sum(partials) * inv_numel


def _reference(adv_patch, printability_colors):
    # Pure-JAX replica of the PyTorch forward, building the full (N,3,S,S) array.
    n = printability_colors.shape[0]
    side = adv_patch.shape[-1]
    pa = jnp.broadcast_to(printability_colors[:, :, None, None], (n, 3, side, side))
    d = adv_patch[None] - pa + 1e-6
    d = d ** 2
    d = jnp.sum(d, axis=1) + 1e-6
    d = jnp.sqrt(d)
    dmin = jnp.min(d, axis=0)
    return jnp.sum(dmin) / adv_patch.size


if __name__ == "__main__":
    # TODO(synk): the printability CSV file read of the original module is host-side
    # I/O; deterministic synthetic colors are used here instead.
    key = jax.random.PRNGKey(0)
    k_patch, k_cols, k_patch2 = jax.random.split(key, 3)

    n_colors = 30
    printability_colors = jax.random.uniform(
        k_cols, (n_colors, 3), dtype=jnp.float32, minval=0.0, maxval=1.0)

    # Small patch (single tile, single strip).
    side = 16
    adv_patch = jax.random.uniform(
        k_patch, (3, side, side), dtype=jnp.float32, minval=0.0, maxval=1.0)
    out = jax.block_until_ready(nps_score(adv_patch, printability_colors))
    ref = _reference(adv_patch, printability_colors)
    assert jnp.allclose(out, ref, rtol=1e-5, atol=1e-6), (out, ref)

    # Larger patch exercising the multi-tile parallel grid, the strip loop and
    # the ragged-tail mask.
    side2 = 80
    adv_patch2 = jax.random.uniform(
        k_patch2, (3, side2, side2), dtype=jnp.float32, minval=0.0, maxval=1.0)
    out2 = jax.block_until_ready(nps_score(adv_patch2, printability_colors))
    ref2 = _reference(adv_patch2, printability_colors)
    assert jnp.allclose(out2, ref2, rtol=1e-5, atol=1e-6), (out2, ref2)

    print("KERNEL_OK")
</pallas_src>

<mosaic_0001>
module attributes {stable_mosaic.version = 11 : i64} {
  func.func @kernel(%arg0: i32, %arg1: memref<90xf32, #tpu.memory_space<smem>>, %arg2: memref<3x1x8x128xf32, #tpu.memory_space<vmem>>, %arg3: memref<1x8x128xf32, #tpu.memory_space<vmem>>) attributes {dimension_semantics = [#tpu.dimension_semantics<parallel>], iteration_bounds = array<i64: 1>, scalar_prefetch = 0 : i64, scratch_operands = 0 : i64, tpu.core_type = #tpu.core_type<tc>, window_params = [{transform_indices = @transform_0, window_bounds = array<i64: 90>}, {transform_indices = @transform_1, window_bounds = array<i64: 3, 1, 8, 128>}, {transform_indices = @transform_2, window_bounds = array<i64: 1, 8, 128>}]} {
    %c0 = arith.constant 0 : index
    %0 = memref.load %arg1[%c0] : memref<90xf32, #tpu.memory_space<smem>>
    %cst = arith.constant 9.99999997E-7 : f32
    %1 = arith.subf %0, %cst : f32
    %c1 = arith.constant 1 : index
    %2 = memref.load %arg1[%c1] : memref<90xf32, #tpu.memory_space<smem>>
    %cst_0 = arith.constant 9.99999997E-7 : f32
    %3 = arith.subf %2, %cst_0 : f32
    %c2 = arith.constant 2 : index
    %4 = memref.load %arg1[%c2] : memref<90xf32, #tpu.memory_space<smem>>
    %cst_1 = arith.constant 9.99999997E-7 : f32
    %5 = arith.subf %4, %cst_1 : f32
    %c3 = arith.constant 3 : index
    %6 = memref.load %arg1[%c3] : memref<90xf32, #tpu.memory_space<smem>>
    %cst_2 = arith.constant 9.99999997E-7 : f32
    %7 = arith.subf %6, %cst_2 : f32
    %c4 = arith.constant 4 : index
    %8 = memref.load %arg1[%c4] : memref<90xf32, #tpu.memory_space<smem>>
    %cst_3 = arith.constant 9.99999997E-7 : f32
    %9 = arith.subf %8, %cst_3 : f32
    %c5 = arith.constant 5 : index
    %10 = memref.load %arg1[%c5] : memref<90xf32, #tpu.memory_space<smem>>
    %cst_4 = arith.constant 9.99999997E-7 : f32
    %11 = arith.subf %10, %cst_4 : f32
    %c6 = arith.constant 6 : index
    %12 = memref.load %arg1[%c6] : memref<90xf32, #tpu.memory_space<smem>>
    %cst_5 = arith.constant 9.99999997E-7 : f32
    %13 = arith.subf %12, %cst_5 : f32
    %c7 = arith.constant 7 : index
    %14 = memref.load %arg1[%c7] : memref<90xf32, #tpu.memory_space<smem>>
    %cst_6 = arith.constant 9.99999997E-7 : f32
    %15 = arith.subf %14, %cst_6 : f32
    %c8 = arith.constant 8 : index
    %16 = memref.load %arg1[%c8] : memref<90xf32, #tpu.memory_space<smem>>
    %cst_7 = arith.constant 9.99999997E-7 : f32
    %17 = arith.subf %16, %cst_7 : f32
    %c9 = arith.constant 9 : index
    %18 = memref.load %arg1[%c9] : memref<90xf32, #tpu.memory_space<smem>>
    %cst_8 = arith.constant 9.99999997E-7 : f32
    %19 = arith.subf %18, %cst_8 : f32
    %c10 = arith.constant 10 : index
    %20 = memref.load %arg1[%c10] : memref<90xf32, #tpu.memory_space<smem>>
    %cst_9 = arith.constant 9.99999997E-7 : f32
    %21 = arith.subf %20, %cst_9 : f32
    %c11 = arith.constant 11 : index
    %22 = memref.load %arg1[%c11] : memref<90xf32, #tpu.memory_space<smem>>
    %cst_10 = arith.constant 9.99999997E-7 : f32
    %23 = arith.subf %22, %cst_10 : f32
    %c12 = arith.constant 12 : index
    %24 = memref.load %arg1[%c12] : memref<90xf32, #tpu.memory_space<smem>>
    %cst_11 = arith.constant 9.99999997E-7 : f32
    %25 = arith.subf %24, %cst_11 : f32
    %c13 = arith.constant 13 : index
    %26 = memref.load %arg1[%c13] : memref<90xf32, #tpu.memory_space<smem>>
    %cst_12 = arith.constant 9.99999997E-7 : f32
    %27 = arith.subf %26, %cst_12 : f32
    %c14 = arith.constant 14 : index
    %28 = memref.load %arg1[%c14] : memref<90xf32, #tpu.memory_space<smem>>
    %cst_13 = arith.constant 9.99999997E-7 : f32
    %29 = arith.subf %28, %cst_13 : f32
    %c15 = arith.constant 15 : index
    %30 = memref.load %arg1[%c15] : memref<90xf32, #tpu.memory_space<smem>>
    %cst_14 = arith.constant 9.99999997E-7 : f32
    %31 = arith.subf %30, %cst_14 : f32
    %c16 = arith.constant 16 : index
    %32 = memref.load %arg1[%c16] : memref<90xf32, #tpu.memory_space<smem>>
    %cst_15 = arith.constant 9.99999997E-7 : f32
    %33 = arith.subf %32, %cst_15 : f32
    %c17 = arith.constant 17 : index
    %34 = memref.load %arg1[%c17] : memref<90xf32, #tpu.memory_space<smem>>
    %cst_16 = arith.constant 9.99999997E-7 : f32
    %35 = arith.subf %34, %cst_16 : f32
    %c18 = arith.constant 18 : index
    %36 = memref.load %arg1[%c18] : memref<90xf32, #tpu.memory_space<smem>>
    %cst_17 = arith.constant 9.99999997E-7 : f32
    %37 = arith.subf %36, %cst_17 : f32
    %c19 = arith.constant 19 : index
    %38 = memref.load %arg1[%c19] : memref<90xf32, #tpu.memory_space<smem>>
    %cst_18 = arith.constant 9.99999997E-7 : f32
    %39 = arith.subf %38, %cst_18 : f32
    %c20 = arith.constant 20 : index
    %40 = memref.load %arg1[%c20] : memref<90xf32, #tpu.memory_space<smem>>
    %cst_19 = arith.constant 9.99999997E-7 : f32
    %41 = arith.subf %40, %cst_19 : f32
    %c21 = arith.constant 21 : index
    %42 = memref.load %arg1[%c21] : memref<90xf32, #tpu.memory_space<smem>>
    %cst_20 = arith.constant 9.99999997E-7 : f32
    %43 = arith.subf %42, %cst_20 : f32
    %c22 = arith.constant 22 : index
    %44 = memref.load %arg1[%c22] : memref<90xf32, #tpu.memory_space<smem>>
    %cst_21 = arith.constant 9.99999997E-7 : f32
    %45 = arith.subf %44, %cst_21 : f32
    %c23 = arith.constant 23 : index
    %46 = memref.load %arg1[%c23] : memref<90xf32, #tpu.memory_space<smem>>
    %cst_22 = arith.constant 9.99999997E-7 : f32
    %47 = arith.subf %46, %cst_22 : f32
    %c24 = arith.constant 24 : index
    %48 = memref.load %arg1[%c24] : memref<90xf32, #tpu.memory_space<smem>>
    %cst_23 = arith.constant 9.99999997E-7 : f32
    %49 = arith.subf %48, %cst_23 : f32
    %c25 = arith.constant 25 : index
    %50 = memref.load %arg1[%c25] : memref<90xf32, #tpu.memory_space<smem>>
    %cst_24 = arith.constant 9.99999997E-7 : f32
    %51 = arith.subf %50, %cst_24 : f32
    %c26 = arith.constant 26 : index
    %52 = memref.load %arg1[%c26] : memref<90xf32, #tpu.memory_space<smem>>
    %cst_25 = arith.constant 9.99999997E-7 : f32
    %53 = arith.subf %52, %cst_25 : f32
    %c27 = arith.constant 27 : index
    %54 = memref.load %arg1[%c27] : memref<90xf32, #tpu.memory_space<smem>>
    %cst_26 = arith.constant 9.99999997E-7 : f32
    %55 = arith.subf %54, %cst_26 : f32
    %c28 = arith.constant 28 : index
    %56 = memref.load %arg1[%c28] : memref<90xf32, #tpu.memory_space<smem>>
    %cst_27 = arith.constant 9.99999997E-7 : f32
    %57 = arith.subf %56, %cst_27 : f32
    %c29 = arith.constant 29 : index
    %58 = memref.load %arg1[%c29] : memref<90xf32, #tpu.memory_space<smem>>
    %cst_28 = arith.constant 9.99999997E-7 : f32
    %59 = arith.subf %58, %cst_28 : f32
    %c30 = arith.constant 30 : index
    %60 = memref.load %arg1[%c30] : memref<90xf32, #tpu.memory_space<smem>>
    %cst_29 = arith.constant 9.99999997E-7 : f32
    %61 = arith.subf %60, %cst_29 : f32
    %c31 = arith.constant 31 : index
    %62 = memref.load %arg1[%c31] : memref<90xf32, #tpu.memory_space<smem>>
    %cst_30 = arith.constant 9.99999997E-7 : f32
    %63 = arith.subf %62, %cst_30 : f32
    %c32 = arith.constant 32 : index
    %64 = memref.load %arg1[%c32] : memref<90xf32, #tpu.memory_space<smem>>
    %cst_31 = arith.constant 9.99999997E-7 : f32
    %65 = arith.subf %64, %cst_31 : f32
    %c33 = arith.constant 33 : index
    %66 = memref.load %arg1[%c33] : memref<90xf32, #tpu.memory_space<smem>>
    %cst_32 = arith.constant 9.99999997E-7 : f32
    %67 = arith.subf %66, %cst_32 : f32
    %c34 = arith.constant 34 : index
    %68 = memref.load %arg1[%c34] : memref<90xf32, #tpu.memory_space<smem>>
    %cst_33 = arith.constant 9.99999997E-7 : f32
    %69 = arith.subf %68, %cst_33 : f32
    %c35 = arith.constant 35 : index
    %70 = memref.load %arg1[%c35] : memref<90xf32, #tpu.memory_space<smem>>
    %cst_34 = arith.constant 9.99999997E-7 : f32
    %71 = arith.subf %70, %cst_34 : f32
    %c36 = arith.constant 36 : index
    %72 = memref.load %arg1[%c36] : memref<90xf32, #tpu.memory_space<smem>>
    %cst_35 = arith.constant 9.99999997E-7 : f32
    %73 = arith.subf %72, %cst_35 : f32
    %c37 = arith.constant 37 : index
    %74 = memref.load %arg1[%c37] : memref<90xf32, #tpu.memory_space<smem>>
    %cst_36 = arith.constant 9.99999997E-7 : f32
    %75 = arith.subf %74, %cst_36 : f32
    %c38 = arith.constant 38 : index
    %76 = memref.load %arg1[%c38] : memref<90xf32, #tpu.memory_space<smem>>
    %cst_37 = arith.constant 9.99999997E-7 : f32
    %77 = arith.subf %76, %cst_37 : f32
    %c39 = arith.constant 39 : index
    %78 = memref.load %arg1[%c39] : memref<90xf32, #tpu.memory_space<smem>>
    %cst_38 = arith.constant 9.99999997E-7 : f32
    %79 = arith.subf %78, %cst_38 : f32
    %c40 = arith.constant 40 : index
    %80 = memref.load %arg1[%c40] : memref<90xf32, #tpu.memory_space<smem>>
    %cst_39 = arith.constant 9.99999997E-7 : f32
    %81 = arith.subf %80, %cst_39 : f32
    %c41 = arith.constant 41 : index
    %82 = memref.load %arg1[%c41] : memref<90xf32, #tpu.memory_space<smem>>
    %cst_40 = arith.constant 9.99999997E-7 : f32
    %83 = arith.subf %82, %cst_40 : f32
    %c42 = arith.constant 42 : index
    %84 = memref.load %arg1[%c42] : memref<90xf32, #tpu.memory_space<smem>>
    %cst_41 = arith.constant 9.99999997E-7 : f32
    %85 = arith.subf %84, %cst_41 : f32
    %c43 = arith.constant 43 : index
    %86 = memref.load %arg1[%c43] : memref<90xf32, #tpu.memory_space<smem>>
    %cst_42 = arith.constant 9.99999997E-7 : f32
    %87 = arith.subf %86, %cst_42 : f32
    %c44 = arith.constant 44 : index
    %88 = memref.load %arg1[%c44] : memref<90xf32, #tpu.memory_space<smem>>
    %cst_43 = arith.constant 9.99999997E-7 : f32
    %89 = arith.subf %88, %cst_43 : f32
    %c45 = arith.constant 45 : index
    %90 = memref.load %arg1[%c45] : memref<90xf32, #tpu.memory_space<smem>>
    %cst_44 = arith.constant 9.99999997E-7 : f32
    %91 = arith.subf %90, %cst_44 : f32
    %c46 = arith.constant 46 : index
    %92 = memref.load %arg1[%c46] : memref<90xf32, #tpu.memory_space<smem>>
    %cst_45 = arith.constant 9.99999997E-7 : f32
    %93 = arith.subf %92, %cst_45 : f32
    %c47 = arith.constant 47 : index
    %94 = memref.load %arg1[%c47] : memref<90xf32, #tpu.memory_space<smem>>
    %cst_46 = arith.constant 9.99999997E-7 : f32
    %95 = arith.subf %94, %cst_46 : f32
    %c48 = arith.constant 48 : index
    %96 = memref.load %arg1[%c48] : memref<90xf32, #tpu.memory_space<smem>>
    %cst_47 = arith.constant 9.99999997E-7 : f32
    %97 = arith.subf %96, %cst_47 : f32
    %c49 = arith.constant 49 : index
    %98 = memref.load %arg1[%c49] : memref<90xf32, #tpu.memory_space<smem>>
    %cst_48 = arith.constant 9.99999997E-7 : f32
    %99 = arith.subf %98, %cst_48 : f32
    %c50 = arith.constant 50 : index
    %100 = memref.load %arg1[%c50] : memref<90xf32, #tpu.memory_space<smem>>
    %cst_49 = arith.constant 9.99999997E-7 : f32
    %101 = arith.subf %100, %cst_49 : f32
    %c51 = arith.constant 51 : index
    %102 = memref.load %arg1[%c51] : memref<90xf32, #tpu.memory_space<smem>>
    %cst_50 = arith.constant 9.99999997E-7 : f32
    %103 = arith.subf %102, %cst_50 : f32
    %c52 = arith.constant 52 : index
    %104 = memref.load %arg1[%c52] : memref<90xf32, #tpu.memory_space<smem>>
    %cst_51 = arith.constant 9.99999997E-7 : f32
    %105 = arith.subf %104, %cst_51 : f32
    %c53 = arith.constant 53 : index
    %106 = memref.load %arg1[%c53] : memref<90xf32, #tpu.memory_space<smem>>
    %cst_52 = arith.constant 9.99999997E-7 : f32
    %107 = arith.subf %106, %cst_52 : f32
    %c54 = arith.constant 54 : index
    %108 = memref.load %arg1[%c54] : memref<90xf32, #tpu.memory_space<smem>>
    %cst_53 = arith.constant 9.99999997E-7 : f32
    %109 = arith.subf %108, %cst_53 : f32
    %c55 = arith.constant 55 : index
    %110 = memref.load %arg1[%c55] : memref<90xf32, #tpu.memory_space<smem>>
    %cst_54 = arith.constant 9.99999997E-7 : f32
    %111 = arith.subf %110, %cst_54 : f32
    %c56 = arith.constant 56 : index
    %112 = memref.load %arg1[%c56] : memref<90xf32, #tpu.memory_space<smem>>
    %cst_55 = arith.constant 9.99999997E-7 : f32
    %113 = arith.subf %112, %cst_55 : f32
    %c57 = arith.constant 57 : index
    %114 = memref.load %arg1[%c57] : memref<90xf32, #tpu.memory_space<smem>>
    %cst_56 = arith.constant 9.99999997E-7 : f32
    %115 = arith.subf %114, %cst_56 : f32
    %c58 = arith.constant 58 : index
    %116 = memref.load %arg1[%c58] : memref<90xf32, #tpu.memory_space<smem>>
    %cst_57 = arith.constant 9.99999997E-7 : f32
    %117 = arith.subf %116, %cst_57 : f32
    %c59 = arith.constant 59 : index
    %118 = memref.load %arg1[%c59] : memref<90xf32, #tpu.memory_space<smem>>
    %cst_58 = arith.constant 9.99999997E-7 : f32
    %119 = arith.subf %118, %cst_58 : f32
    %c60 = arith.constant 60 : index
    %120 = memref.load %arg1[%c60] : memref<90xf32, #tpu.memory_space<smem>>
    %cst_59 = arith.constant 9.99999997E-7 : f32
    %121 = arith.subf %120, %cst_59 : f32
    %c61 = arith.constant 61 : index
    %122 = memref.load %arg1[%c61] : memref<90xf32, #tpu.memory_space<smem>>
    %cst_60 = arith.constant 9.99999997E-7 : f32
    %123 = arith.subf %122, %cst_60 : f32
    %c62 = arith.constant 62 : index
    %124 = memref.load %arg1[%c62] : memref<90xf32, #tpu.memory_space<smem>>
    %cst_61 = arith.constant 9.99999997E-7 : f32
    %125 = arith.subf %124, %cst_61 : f32
    %c63 = arith.constant 63 : index
    %126 = memref.load %arg1[%c63] : memref<90xf32, #tpu.memory_space<smem>>
    %cst_62 = arith.constant 9.99999997E-7 : f32
    %127 = arith.subf %126, %cst_62 : f32
    %c64 = arith.constant 64 : index
    %128 = memref.load %arg1[%c64] : memref<90xf32, #tpu.memory_space<smem>>
    %cst_63 = arith.constant 9.99999997E-7 : f32
    %129 = arith.subf %128, %cst_63 : f32
    %c65 = arith.constant 65 : index
    %130 = memref.load %arg1[%c65] : memref<90xf32, #tpu.memory_space<smem>>
    %cst_64 = arith.constant 9.99999997E-7 : f32
    %131 = arith.subf %130, %cst_64 : f32
    %c66 = arith.constant 66 : index
    %132 = memref.load %arg1[%c66] : memref<90xf32, #tpu.memory_space<smem>>
    %cst_65 = arith.constant 9.99999997E-7 : f32
    %133 = arith.subf %132, %cst_65 : f32
    %c67 = arith.constant 67 : index
    %134 = memref.load %arg1[%c67] : memref<90xf32, #tpu.memory_space<smem>>
    %cst_66 = arith.constant 9.99999997E-7 : f32
    %135 = arith.subf %134, %cst_66 : f32
    %c68 = arith.constant 68 : index
    %136 = memref.load %arg1[%c68] : memref<90xf32, #tpu.memory_space<smem>>
    %cst_67 = arith.constant 9.99999997E-7 : f32
    %137 = arith.subf %136, %cst_67 : f32
    %c69 = arith.constant 69 : index
    %138 = memref.load %arg1[%c69] : memref<90xf32, #tpu.memory_space<smem>>
    %cst_68 = arith.constant 9.99999997E-7 : f32
    %139 = arith.subf %138, %cst_68 : f32
    %c70 = arith.constant 70 : index
    %140 = memref.load %arg1[%c70] : memref<90xf32, #tpu.memory_space<smem>>
    %cst_69 = arith.constant 9.99999997E-7 : f32
    %141 = arith.subf %140, %cst_69 : f32
    %c71 = arith.constant 71 : index
    %142 = memref.load %arg1[%c71] : memref<90xf32, #tpu.memory_space<smem>>
    %cst_70 = arith.constant 9.99999997E-7 : f32
    %143 = arith.subf %142, %cst_70 : f32
    %c72 = arith.constant 72 : index
    %144 = memref.load %arg1[%c72] : memref<90xf32, #tpu.memory_space<smem>>
    %cst_71 = arith.constant 9.99999997E-7 : f32
    %145 = arith.subf %144, %cst_71 : f32
    %c73 = arith.constant 73 : index
    %146 = memref.load %arg1[%c73] : memref<90xf32, #tpu.memory_space<smem>>
    %cst_72 = arith.constant 9.99999997E-7 : f32
    %147 = arith.subf %146, %cst_72 : f32
    %c74 = arith.constant 74 : index
    %148 = memref.load %arg1[%c74] : memref<90xf32, #tpu.memory_space<smem>>
    %cst_73 = arith.constant 9.99999997E-7 : f32
    %149 = arith.subf %148, %cst_73 : f32
    %c75 = arith.constant 75 : index
    %150 = memref.load %arg1[%c75] : memref<90xf32, #tpu.memory_space<smem>>
    %cst_74 = arith.constant 9.99999997E-7 : f32
    %151 = arith.subf %150, %cst_74 : f32
    %c76 = arith.constant 76 : index
    %152 = memref.load %arg1[%c76] : memref<90xf32, #tpu.memory_space<smem>>
    %cst_75 = arith.constant 9.99999997E-7 : f32
    %153 = arith.subf %152, %cst_75 : f32
    %c77 = arith.constant 77 : index
    %154 = memref.load %arg1[%c77] : memref<90xf32, #tpu.memory_space<smem>>
    %cst_76 = arith.constant 9.99999997E-7 : f32
    %155 = arith.subf %154, %cst_76 : f32
    %c78 = arith.constant 78 : index
    %156 = memref.load %arg1[%c78] : memref<90xf32, #tpu.memory_space<smem>>
    %cst_77 = arith.constant 9.99999997E-7 : f32
    %157 = arith.subf %156, %cst_77 : f32
    %c79 = arith.constant 79 : index
    %158 = memref.load %arg1[%c79] : memref<90xf32, #tpu.memory_space<smem>>
    %cst_78 = arith.constant 9.99999997E-7 : f32
    %159 = arith.subf %158, %cst_78 : f32
    %c80 = arith.constant 80 : index
    %160 = memref.load %arg1[%c80] : memref<90xf32, #tpu.memory_space<smem>>
    %cst_79 = arith.constant 9.99999997E-7 : f32
    %161 = arith.subf %160, %cst_79 : f32
    %c81 = arith.constant 81 : index
    %162 = memref.load %arg1[%c81] : memref<90xf32, #tpu.memory_space<smem>>
    %cst_80 = arith.constant 9.99999997E-7 : f32
    %163 = arith.subf %162, %cst_80 : f32
    %c82 = arith.constant 82 : index
    %164 = memref.load %arg1[%c82] : memref<90xf32, #tpu.memory_space<smem>>
    %cst_81 = arith.constant 9.99999997E-7 : f32
    %165 = arith.subf %164, %cst_81 : f32
    %c83 = arith.constant 83 : index
    %166 = memref.load %arg1[%c83] : memref<90xf32, #tpu.memory_space<smem>>
    %cst_82 = arith.constant 9.99999997E-7 : f32
    %167 = arith.subf %166, %cst_82 : f32
    %c84 = arith.constant 84 : index
    %168 = memref.load %arg1[%c84] : memref<90xf32, #tpu.memory_space<smem>>
    %cst_83 = arith.constant 9.99999997E-7 : f32
    %169 = arith.subf %168, %cst_83 : f32
    %c85 = arith.constant 85 : index
    %170 = memref.load %arg1[%c85] : memref<90xf32, #tpu.memory_space<smem>>
    %cst_84 = arith.constant 9.99999997E-7 : f32
    %171 = arith.subf %170, %cst_84 : f32
    %c86 = arith.constant 86 : index
    %172 = memref.load %arg1[%c86] : memref<90xf32, #tpu.memory_space<smem>>
    %cst_85 = arith.constant 9.99999997E-7 : f32
    %173 = arith.subf %172, %cst_85 : f32
    %c87 = arith.constant 87 : index
    %174 = memref.load %arg1[%c87] : memref<90xf32, #tpu.memory_space<smem>>
    %cst_86 = arith.constant 9.99999997E-7 : f32
    %175 = arith.subf %174, %cst_86 : f32
    %c88 = arith.constant 88 : index
    %176 = memref.load %arg1[%c88] : memref<90xf32, #tpu.memory_space<smem>>
    %cst_87 = arith.constant 9.99999997E-7 : f32
    %177 = arith.subf %176, %cst_87 : f32
    %c89 = arith.constant 89 : index
    %178 = memref.load %arg1[%c89] : memref<90xf32, #tpu.memory_space<smem>>
    %cst_88 = arith.constant 9.99999997E-7 : f32
    %179 = arith.subf %178, %cst_88 : f32
    %180 = tpu.iota {dimensions = array<i32: 0>} : vector<8x128xi32>
    %181 = tpu.iota {dimensions = array<i32: 1>} : vector<8x128xi32>
    %c128_i32 = arith.constant 128 : i32
    %182 = vector.broadcast %c128_i32 : i32 to vector<8x128xi32>
    %183 = arith.muli %180, %182 : vector<8x128xi32>
    %184 = arith.addi %183, %181 : vector<8x128xi32>
    %c1024_i32 = arith.constant 1024 : i32
    %185 = arith.muli %arg0, %c1024_i32 : i32
    %cst_89 = arith.constant 0.000000e+00 : f32
    %186 = vector.broadcast %cst_89 : f32 to vector<8x128xf32>
    %c0_i32 = arith.constant 0 : i32
    %c8_i32 = arith.constant 8 : i32
    %187 = arith.muli %c0_i32, %c8_i32 : i32
    %188 = tpu.assume_multiple %187, 8 : i32
    %c0_90 = arith.constant 0 : index
    %c0_91 = arith.constant 0 : index
    %189 = arith.index_cast %188 : i32 to index
    %c0_92 = arith.constant 0 : index
    %190 = vector.load %arg2[%c0_90, %c0_91, %189, %c0_92] : memref<3x1x8x128xf32, #tpu.memory_space<vmem>>, vector<1x1x8x128xf32>
    %191 = vector.shape_cast %190 : vector<1x1x8x128xf32> to vector<8x128xf32>
    %c1_93 = arith.constant 1 : index
    %c0_94 = arith.constant 0 : index
    %192 = arith.index_cast %188 : i32 to index
    %c0_95 = arith.constant 0 : index
    %193 = vector.load %arg2[%c1_93, %c0_94, %192, %c0_95] : memref<3x1x8x128xf32, #tpu.memory_space<vmem>>, vector<1x1x8x128xf32>
    %194 = vector.shape_cast %193 : vector<1x1x8x128xf32> to vector<8x128xf32>
    %c2_96 = arith.constant 2 : index
    %c0_97 = arith.constant 0 : index
    %195 = arith.index_cast %188 : i32 to index
    %c0_98 = arith.constant 0 : index
    %196 = vector.load %arg2[%c2_96, %c0_97, %195, %c0_98] : memref<3x1x8x128xf32, #tpu.memory_space<vmem>>, vector<1x1x8x128xf32>
    %197 = vector.shape_cast %196 : vector<1x1x8x128xf32> to vector<8x128xf32>
    %198 = vector.broadcast %1 : f32 to vector<8x128xf32>
    %199 = arith.subf %191, %198 : vector<8x128xf32>
    %200 = vector.broadcast %3 : f32 to vector<8x128xf32>
    %201 = arith.subf %194, %200 : vector<8x128xf32>
    %202 = vector.broadcast %5 : f32 to vector<8x128xf32>
    %203 = arith.subf %197, %202 : vector<8x128xf32>
    %204 = arith.mulf %199, %199 : vector<8x128xf32>
    %205 = arith.mulf %201, %201 : vector<8x128xf32>
    %206 = arith.addf %204, %205 : vector<8x128xf32>
    %207 = arith.mulf %203, %203 : vector<8x128xf32>
    %208 = arith.addf %206, %207 : vector<8x128xf32>
    %209 = vector.broadcast %7 : f32 to vector<8x128xf32>
    %210 = arith.subf %191, %209 : vector<8x128xf32>
    %211 = vector.broadcast %9 : f32 to vector<8x128xf32>
    %212 = arith.subf %194, %211 : vector<8x128xf32>
    %213 = vector.broadcast %11 : f32 to vector<8x128xf32>
    %214 = arith.subf %197, %213 : vector<8x128xf32>
    %215 = arith.mulf %210, %210 : vector<8x128xf32>
    %216 = arith.mulf %212, %212 : vector<8x128xf32>
    %217 = arith.addf %215, %216 : vector<8x128xf32>
    %218 = arith.mulf %214, %214 : vector<8x128xf32>
    %219 = arith.addf %217, %218 : vector<8x128xf32>
    %220 = arith.minimumf %208, %219 : vector<8x128xf32>
    %221 = vector.broadcast %13 : f32 to vector<8x128xf32>
    %222 = arith.subf %191, %221 : vector<8x128xf32>
    %223 = vector.broadcast %15 : f32 to vector<8x128xf32>
    %224 = arith.subf %194, %223 : vector<8x128xf32>
    %225 = vector.broadcast %17 : f32 to vector<8x128xf32>
    %226 = arith.subf %197, %225 : vector<8x128xf32>
    %227 = arith.mulf %222, %222 : vector<8x128xf32>
    %228 = arith.mulf %224, %224 : vector<8x128xf32>
    %229 = arith.addf %227, %228 : vector<8x128xf32>
    %230 = arith.mulf %226, %226 : vector<8x128xf32>
    %231 = arith.addf %229, %230 : vector<8x128xf32>
    %232 = arith.minimumf %220, %231 : vector<8x128xf32>
    %233 = vector.broadcast %19 : f32 to vector<8x128xf32>
    %234 = arith.subf %191, %233 : vector<8x128xf32>
    %235 = vector.broadcast %21 : f32 to vector<8x128xf32>
    %236 = arith.subf %194, %235 : vector<8x128xf32>
    %237 = vector.broadcast %23 : f32 to vector<8x128xf32>
    %238 = arith.subf %197, %237 : vector<8x128xf32>
    %239 = arith.mulf %234, %234 : vector<8x128xf32>
    %240 = arith.mulf %236, %236 : vector<8x128xf32>
    %241 = arith.addf %239, %240 : vector<8x128xf32>
    %242 = arith.mulf %238, %238 : vector<8x128xf32>
    %243 = arith.addf %241, %242 : vector<8x128xf32>
    %244 = arith.minimumf %232, %243 : vector<8x128xf32>
    %245 = vector.broadcast %25 : f32 to vector<8x128xf32>
    %246 = arith.subf %191, %245 : vector<8x128xf32>
    %247 = vector.broadcast %27 : f32 to vector<8x128xf32>
    %248 = arith.subf %194, %247 : vector<8x128xf32>
    %249 = vector.broadcast %29 : f32 to vector<8x128xf32>
    %250 = arith.subf %197, %249 : vector<8x128xf32>
    %251 = arith.mulf %246, %246 : vector<8x128xf32>
    %252 = arith.mulf %248, %248 : vector<8x128xf32>
    %253 = arith.addf %251, %252 : vector<8x128xf32>
    %254 = arith.mulf %250, %250 : vector<8x128xf32>
    %255 = arith.addf %253, %254 : vector<8x128xf32>
    %256 = arith.minimumf %244, %255 : vector<8x128xf32>
    %257 = vector.broadcast %31 : f32 to vector<8x128xf32>
    %258 = arith.subf %191, %257 : vector<8x128xf32>
    %259 = vector.broadcast %33 : f32 to vector<8x128xf32>
    %260 = arith.subf %194, %259 : vector<8x128xf32>
    %261 = vector.broadcast %35 : f32 to vector<8x128xf32>
    %262 = arith.subf %197, %261 : vector<8x128xf32>
    %263 = arith.mulf %258, %258 : vector<8x128xf32>
    %264 = arith.mulf %260, %260 : vector<8x128xf32>
    %265 = arith.addf %263, %264 : vector<8x128xf32>
    %266 = arith.mulf %262, %262 : vector<8x128xf32>
    %267 = arith.addf %265, %266 : vector<8x128xf32>
    %268 = arith.minimumf %256, %267 : vector<8x128xf32>
    %269 = vector.broadcast %37 : f32 to vector<8x128xf32>
    %270 = arith.subf %191, %269 : vector<8x128xf32>
    %271 = vector.broadcast %39 : f32 to vector<8x128xf32>
    %272 = arith.subf %194, %271 : vector<8x128xf32>
    %273 = vector.broadcast %41 : f32 to vector<8x128xf32>
    %274 = arith.subf %197, %273 : vector<8x128xf32>
    %275 = arith.mulf %270, %270 : vector<8x128xf32>
    %276 = arith.mulf %272, %272 : vector<8x128xf32>
    %277 = arith.addf %275, %276 : vector<8x128xf32>
    %278 = arith.mulf %274, %274 : vector<8x128xf32>
    %279 = arith.addf %277, %278 : vector<8x128xf32>
    %280 = arith.minimumf %268, %279 : vector<8x128xf32>
    %281 = vector.broadcast %43 : f32 to vector<8x128xf32>
    %282 = arith.subf %191, %281 : vector<8x128xf32>
    %283 = vector.broadcast %45 : f32 to vector<8x128xf32>
    %284 = arith.subf %194, %283 : vector<8x128xf32>
    %285 = vector.broadcast %47 : f32 to vector<8x128xf32>
    %286 = arith.subf %197, %285 : vector<8x128xf32>
    %287 = arith.mulf %282, %282 : vector<8x128xf32>
    %288 = arith.mulf %284, %284 : vector<8x128xf32>
    %289 = arith.addf %287, %288 : vector<8x128xf32>
    %290 = arith.mulf %286, %286 : vector<8x128xf32>
    %291 = arith.addf %289, %290 : vector<8x128xf32>
    %292 = arith.minimumf %280, %291 : vector<8x128xf32>
    %293 = vector.broadcast %49 : f32 to vector<8x128xf32>
    %294 = arith.subf %191, %293 : vector<8x128xf32>
    %295 = vector.broadcast %51 : f32 to vector<8x128xf32>
    %296 = arith.subf %194, %295 : vector<8x128xf32>
    %297 = vector.broadcast %53 : f32 to vector<8x128xf32>
    %298 = arith.subf %197, %297 : vector<8x128xf32>
    %299 = arith.mulf %294, %294 : vector<8x128xf32>
    %300 = arith.mulf %296, %296 : vector<8x128xf32>
    %301 = arith.addf %299, %300 : vector<8x128xf32>
    %302 = arith.mulf %298, %298 : vector<8x128xf32>
    %303 = arith.addf %301, %302 : vector<8x128xf32>
    %304 = arith.minimumf %292, %303 : vector<8x128xf32>
    %305 = vector.broadcast %55 : f32 to vector<8x128xf32>
    %306 = arith.subf %191, %305 : vector<8x128xf32>
    %307 = vector.broadcast %57 : f32 to vector<8x128xf32>
    %308 = arith.subf %194, %307 : vector<8x128xf32>
    %309 = vector.broadcast %59 : f32 to vector<8x128xf32>
    %310 = arith.subf %197, %309 : vector<8x128xf32>
    %311 = arith.mulf %306, %306 : vector<8x128xf32>
    %312 = arith.mulf %308, %308 : vector<8x128xf32>
    %313 = arith.addf %311, %312 : vector<8x128xf32>
    %314 = arith.mulf %310, %310 : vector<8x128xf32>
    %315 = arith.addf %313, %314 : vector<8x128xf32>
    %316 = arith.minimumf %304, %315 : vector<8x128xf32>
    %317 = vector.broadcast %61 : f32 to vector<8x128xf32>
    %318 = arith.subf %191, %317 : vector<8x128xf32>
    %319 = vector.broadcast %63 : f32 to vector<8x128xf32>
    %320 = arith.subf %194, %319 : vector<8x128xf32>
    %321 = vector.broadcast %65 : f32 to vector<8x128xf32>
    %322 = arith.subf %197, %321 : vector<8x128xf32>
    %323 = arith.mulf %318, %318 : vector<8x128xf32>
    %324 = arith.mulf %320, %320 : vector<8x128xf32>
    %325 = arith.addf %323, %324 : vector<8x128xf32>
    %326 = arith.mulf %322, %322 : vector<8x128xf32>
    %327 = arith.addf %325, %326 : vector<8x128xf32>
    %328 = arith.minimumf %316, %327 : vector<8x128xf32>
    %329 = vector.broadcast %67 : f32 to vector<8x128xf32>
    %330 = arith.subf %191, %329 : vector<8x128xf32>
    %331 = vector.broadcast %69 : f32 to vector<8x128xf32>
    %332 = arith.subf %194, %331 : vector<8x128xf32>
    %333 = vector.broadcast %71 : f32 to vector<8x128xf32>
    %334 = arith.subf %197, %333 : vector<8x128xf32>
    %335 = arith.mulf %330, %330 : vector<8x128xf32>
    %336 = arith.mulf %332, %332 : vector<8x128xf32>
    %337 = arith.addf %335, %336 : vector<8x128xf32>
    %338 = arith.mulf %334, %334 : vector<8x128xf32>
    %339 = arith.addf %337, %338 : vector<8x128xf32>
    %340 = arith.minimumf %328, %339 : vector<8x128xf32>
    %341 = vector.broadcast %73 : f32 to vector<8x128xf32>
    %342 = arith.subf %191, %341 : vector<8x128xf32>
    %343 = vector.broadcast %75 : f32 to vector<8x128xf32>
    %344 = arith.subf %194, %343 : vector<8x128xf32>
    %345 = vector.broadcast %77 : f32 to vector<8x128xf32>
    %346 = arith.subf %197, %345 : vector<8x128xf32>
    %347 = arith.mulf %342, %342 : vector<8x128xf32>
    %348 = arith.mulf %344, %344 : vector<8x128xf32>
    %349 = arith.addf %347, %348 : vector<8x128xf32>
    %350 = arith.mulf %346, %346 : vector<8x128xf32>
    %351 = arith.addf %349, %350 : vector<8x128xf32>
    %352 = arith.minimumf %340, %351 : vector<8x128xf32>
    %353 = vector.broadcast %79 : f32 to vector<8x128xf32>
    %354 = arith.subf %191, %353 : vector<8x128xf32>
    %355 = vector.broadcast %81 : f32 to vector<8x128xf32>
    %356 = arith.subf %194, %355 : vector<8x128xf32>
    %357 = vector.broadcast %83 : f32 to vector<8x128xf32>
    %358 = arith.subf %197, %357 : vector<8x128xf32>
    %359 = arith.mulf %354, %354 : vector<8x128xf32>
    %360 = arith.mulf %356, %356 : vector<8x128xf32>
    %361 = arith.addf %359, %360 : vector<8x128xf32>
    %362 = arith.mulf %358, %358 : vector<8x128xf32>
    %363 = arith.addf %361, %362 : vector<8x128xf32>
    %364 = arith.minimumf %352, %363 : vector<8x128xf32>
    %365 = vector.broadcast %85 : f32 to vector<8x128xf32>
    %366 = arith.subf %191, %365 : vector<8x128xf32>
    %367 = vector.broadcast %87 : f32 to vector<8x128xf32>
    %368 = arith.subf %194, %367 : vector<8x128xf32>
    %369 = vector.broadcast %89 : f32 to vector<8x128xf32>
    %370 = arith.subf %197, %369 : vector<8x128xf32>
    %371 = arith.mulf %366, %366 : vector<8x128xf32>
    %372 = arith.mulf %368, %368 : vector<8x128xf32>
    %373 = arith.addf %371, %372 : vector<8x128xf32>
    %374 = arith.mulf %370, %370 : vector<8x128xf32>
    %375 = arith.addf %373, %374 : vector<8x128xf32>
    %376 = arith.minimumf %364, %375 : vector<8x128xf32>
    %377 = vector.broadcast %91 : f32 to vector<8x128xf32>
    %378 = arith.subf %191, %377 : vector<8x128xf32>
    %379 = vector.broadcast %93 : f32 to vector<8x128xf32>
    %380 = arith.subf %194, %379 : vector<8x128xf32>
    %381 = vector.broadcast %95 : f32 to vector<8x128xf32>
    %382 = arith.subf %197, %381 : vector<8x128xf32>
    %383 = arith.mulf %378, %378 : vector<8x128xf32>
    %384 = arith.mulf %380, %380 : vector<8x128xf32>
    %385 = arith.addf %383, %384 : vector<8x128xf32>
    %386 = arith.mulf %382, %382 : vector<8x128xf32>
    %387 = arith.addf %385, %386 : vector<8x128xf32>
    %388 = arith.minimumf %376, %387 : vector<8x128xf32>
    %389 = vector.broadcast %97 : f32 to vector<8x128xf32>
    %390 = arith.subf %191, %389 : vector<8x128xf32>
    %391 = vector.broadcast %99 : f32 to vector<8x128xf32>
    %392 = arith.subf %194, %391 : vector<8x128xf32>
    %393 = vector.broadcast %101 : f32 to vector<8x128xf32>
    %394 = arith.subf %197, %393 : vector<8x128xf32>
    %395 = arith.mulf %390, %390 : vector<8x128xf32>
    %396 = arith.mulf %392, %392 : vector<8x128xf32>
    %397 = arith.addf %395, %396 : vector<8x128xf32>
    %398 = arith.mulf %394, %394 : vector<8x128xf32>
    %399 = arith.addf %397, %398 : vector<8x128xf32>
    %400 = arith.minimumf %388, %399 : vector<8x128xf32>
    %401 = vector.broadcast %103 : f32 to vector<8x128xf32>
    %402 = arith.subf %191, %401 : vector<8x128xf32>
    %403 = vector.broadcast %105 : f32 to vector<8x128xf32>
    %404 = arith.subf %194, %403 : vector<8x128xf32>
    %405 = vector.broadcast %107 : f32 to vector<8x128xf32>
    %406 = arith.subf %197, %405 : vector<8x128xf32>
    %407 = arith.mulf %402, %402 : vector<8x128xf32>
    %408 = arith.mulf %404, %404 : vector<8x128xf32>
    %409 = arith.addf %407, %408 : vector<8x128xf32>
    %410 = arith.mulf %406, %406 : vector<8x128xf32>
    %411 = arith.addf %409, %410 : vector<8x128xf32>
    %412 = arith.minimumf %400, %411 : vector<8x128xf32>
    %413 = vector.broadcast %109 : f32 to vector<8x128xf32>
    %414 = arith.subf %191, %413 : vector<8x128xf32>
    %415 = vector.broadcast %111 : f32 to vector<8x128xf32>
    %416 = arith.subf %194, %415 : vector<8x128xf32>
    %417 = vector.broadcast %113 : f32 to vector<8x128xf32>
    %418 = arith.subf %197, %417 : vector<8x128xf32>
    %419 = arith.mulf %414, %414 : vector<8x128xf32>
    %420 = arith.mulf %416, %416 : vector<8x128xf32>
    %421 = arith.addf %419, %420 : vector<8x128xf32>
    %422 = arith.mulf %418, %418 : vector<8x128xf32>
    %423 = arith.addf %421, %422 : vector<8x128xf32>
    %424 = arith.minimumf %412, %423 : vector<8x128xf32>
    %425 = vector.broadcast %115 : f32 to vector<8x128xf32>
    %426 = arith.subf %191, %425 : vector<8x128xf32>
    %427 = vector.broadcast %117 : f32 to vector<8x128xf32>
    %428 = arith.subf %194, %427 : vector<8x128xf32>
    %429 = vector.broadcast %119 : f32 to vector<8x128xf32>
    %430 = arith.subf %197, %429 : vector<8x128xf32>
    %431 = arith.mulf %426, %426 : vector<8x128xf32>
    %432 = arith.mulf %428, %428 : vector<8x128xf32>
    %433 = arith.addf %431, %432 : vector<8x128xf32>
    %434 = arith.mulf %430, %430 : vector<8x128xf32>
    %435 = arith.addf %433, %434 : vector<8x128xf32>
    %436 = arith.minimumf %424, %435 : vector<8x128xf32>
    %437 = vector.broadcast %121 : f32 to vector<8x128xf32>
    %438 = arith.subf %191, %437 : vector<8x128xf32>
    %439 = vector.broadcast %123 : f32 to vector<8x128xf32>
    %440 = arith.subf %194, %439 : vector<8x128xf32>
    %441 = vector.broadcast %125 : f32 to vector<8x128xf32>
    %442 = arith.subf %197, %441 : vector<8x128xf32>
    %443 = arith.mulf %438, %438 : vector<8x128xf32>
    %444 = arith.mulf %440, %440 : vector<8x128xf32>
    %445 = arith.addf %443, %444 : vector<8x128xf32>
    %446 = arith.mulf %442, %442 : vector<8x128xf32>
    %447 = arith.addf %445, %446 : vector<8x128xf32>
    %448 = arith.minimumf %436, %447 : vector<8x128xf32>
    %449 = vector.broadcast %127 : f32 to vector<8x128xf32>
    %450 = arith.subf %191, %449 : vector<8x128xf32>
    %451 = vector.broadcast %129 : f32 to vector<8x128xf32>
    %452 = arith.subf %194, %451 : vector<8x128xf32>
    %453 = vector.broadcast %131 : f32 to vector<8x128xf32>
    %454 = arith.subf %197, %453 : vector<8x128xf32>
    %455 = arith.mulf %450, %450 : vector<8x128xf32>
    %456 = arith.mulf %452, %452 : vector<8x128xf32>
    %457 = arith.addf %455, %456 : vector<8x128xf32>
    %458 = arith.mulf %454, %454 : vector<8x128xf32>
    %459 = arith.addf %457, %458 : vector<8x128xf32>
    %460 = arith.minimumf %448, %459 : vector<8x128xf32>
    %461 = vector.broadcast %133 : f32 to vector<8x128xf32>
    %462 = arith.subf %191, %461 : vector<8x128xf32>
    %463 = vector.broadcast %135 : f32 to vector<8x128xf32>
    %464 = arith.subf %194, %463 : vector<8x128xf32>
    %465 = vector.broadcast %137 : f32 to vector<8x128xf32>
    %466 = arith.subf %197, %465 : vector<8x128xf32>
    %467 = arith.mulf %462, %462 : vector<8x128xf32>
    %468 = arith.mulf %464, %464 : vector<8x128xf32>
    %469 = arith.addf %467, %468 : vector<8x128xf32>
    %470 = arith.mulf %466, %466 : vector<8x128xf32>
    %471 = arith.addf %469, %470 : vector<8x128xf32>
    %472 = arith.minimumf %460, %471 : vector<8x128xf32>
    %473 = vector.broadcast %139 : f32 to vector<8x128xf32>
    %474 = arith.subf %191, %473 : vector<8x128xf32>
    %475 = vector.broadcast %141 : f32 to vector<8x128xf32>
    %476 = arith.subf %194, %475 : vector<8x128xf32>
    %477 = vector.broadcast %143 : f32 to vector<8x128xf32>
    %478 = arith.subf %197, %477 : vector<8x128xf32>
    %479 = arith.mulf %474, %474 : vector<8x128xf32>
    %480 = arith.mulf %476, %476 : vector<8x128xf32>
    %481 = arith.addf %479, %480 : vector<8x128xf32>
    %482 = arith.mulf %478, %478 : vector<8x128xf32>
    %483 = arith.addf %481, %482 : vector<8x128xf32>
    %484 = arith.minimumf %472, %483 : vector<8x128xf32>
    %485 = vector.broadcast %145 : f32 to vector<8x128xf32>
    %486 = arith.subf %191, %485 : vector<8x128xf32>
    %487 = vector.broadcast %147 : f32 to vector<8x128xf32>
    %488 = arith.subf %194, %487 : vector<8x128xf32>
    %489 = vector.broadcast %149 : f32 to vector<8x128xf32>
    %490 = arith.subf %197, %489 : vector<8x128xf32>
    %491 = arith.mulf %486, %486 : vector<8x128xf32>
    %492 = arith.mulf %488, %488 : vector<8x128xf32>
    %493 = arith.addf %491, %492 : vector<8x128xf32>
    %494 = arith.mulf %490, %490 : vector<8x128xf32>
    %495 = arith.addf %493, %494 : vector<8x128xf32>
    %496 = arith.minimumf %484, %495 : vector<8x128xf32>
    %497 = vector.broadcast %151 : f32 to vector<8x128xf32>
    %498 = arith.subf %191, %497 : vector<8x128xf32>
    %499 = vector.broadcast %153 : f32 to vector<8x128xf32>
    %500 = arith.subf %194, %499 : vector<8x128xf32>
    %501 = vector.broadcast %155 : f32 to vector<8x128xf32>
    %502 = arith.subf %197, %501 : vector<8x128xf32>
    %503 = arith.mulf %498, %498 : vector<8x128xf32>
    %504 = arith.mulf %500, %500 : vector<8x128xf32>
    %505 = arith.addf %503, %504 : vector<8x128xf32>
    %506 = arith.mulf %502, %502 : vector<8x128xf32>
    %507 = arith.addf %505, %506 : vector<8x128xf32>
    %508 = arith.minimumf %496, %507 : vector<8x128xf32>
    %509 = vector.broadcast %157 : f32 to vector<8x128xf32>
    %510 = arith.subf %191, %509 : vector<8x128xf32>
    %511 = vector.broadcast %159 : f32 to vector<8x128xf32>
    %512 = arith.subf %194, %511 : vector<8x128xf32>
    %513 = vector.broadcast %161 : f32 to vector<8x128xf32>
    %514 = arith.subf %197, %513 : vector<8x128xf32>
    %515 = arith.mulf %510, %510 : vector<8x128xf32>
    %516 = arith.mulf %512, %512 : vector<8x128xf32>
    %517 = arith.addf %515, %516 : vector<8x128xf32>
    %518 = arith.mulf %514, %514 : vector<8x128xf32>
    %519 = arith.addf %517, %518 : vector<8x128xf32>
    %520 = arith.minimumf %508, %519 : vector<8x128xf32>
    %521 = vector.broadcast %163 : f32 to vector<8x128xf32>
    %522 = arith.subf %191, %521 : vector<8x128xf32>
    %523 = vector.broadcast %165 : f32 to vector<8x128xf32>
    %524 = arith.subf %194, %523 : vector<8x128xf32>
    %525 = vector.broadcast %167 : f32 to vector<8x128xf32>
    %526 = arith.subf %197, %525 : vector<8x128xf32>
    %527 = arith.mulf %522, %522 : vector<8x128xf32>
    %528 = arith.mulf %524, %524 : vector<8x128xf32>
    %529 = arith.addf %527, %528 : vector<8x128xf32>
    %530 = arith.mulf %526, %526 : vector<8x128xf32>
    %531 = arith.addf %529, %530 : vector<8x128xf32>
    %532 = arith.minimumf %520, %531 : vector<8x128xf32>
    %533 = vector.broadcast %169 : f32 to vector<8x128xf32>
    %534 = arith.subf %191, %533 : vector<8x128xf32>
    %535 = vector.broadcast %171 : f32 to vector<8x128xf32>
    %536 = arith.subf %194, %535 : vector<8x128xf32>
    %537 = vector.broadcast %173 : f32 to vector<8x128xf32>
    %538 = arith.subf %197, %537 : vector<8x128xf32>
    %539 = arith.mulf %534, %534 : vector<8x128xf32>
    %540 = arith.mulf %536, %536 : vector<8x128xf32>
    %541 = arith.addf %539, %540 : vector<8x128xf32>
    %542 = arith.mulf %538, %538 : vector<8x128xf32>
    %543 = arith.addf %541, %542 : vector<8x128xf32>
    %544 = arith.minimumf %532, %543 : vector<8x128xf32>
    %545 = vector.broadcast %175 : f32 to vector<8x128xf32>
    %546 = arith.subf %191, %545 : vector<8x128xf32>
    %547 = vector.broadcast %177 : f32 to vector<8x128xf32>
    %548 = arith.subf %194, %547 : vector<8x128xf32>
    %549 = vector.broadcast %179 : f32 to vector<8x128xf32>
    %550 = arith.subf %197, %549 : vector<8x128xf32>
    %551 = arith.mulf %546, %546 : vector<8x128xf32>
    %552 = arith.mulf %548, %548 : vector<8x128xf32>
    %553 = arith.addf %551, %552 : vector<8x128xf32>
    %554 = arith.mulf %550, %550 : vector<8x128xf32>
    %555 = arith.addf %553, %554 : vector<8x128xf32>
    %556 = arith.minimumf %544, %555 : vector<8x128xf32>
    %cst_99 = arith.constant 9.99999997E-7 : f32
    %557 = vector.broadcast %cst_99 : f32 to vector<8x128xf32>
    %558 = arith.addf %556, %557 : vector<8x128xf32>
    %559 = math.sqrt %558 : vector<8x128xf32>
    %c0_i32_100 = arith.constant 0 : i32
    %c1024_i32_101 = arith.constant 1024 : i32
    %560 = arith.muli %c0_i32_100, %c1024_i32_101 : i32
    %561 = arith.addi %185, %560 : i32
    %c256_i32 = arith.constant 256 : i32
    %562 = arith.subi %c256_i32, %561 : i32
    %563 = vector.broadcast %562 : i32 to vector<8x128xi32>
    %564 = arith.cmpi slt, %184, %563 : vector<8x128xi32>
    %cst_102 = arith.constant 0.000000e+00 : f32
    %565 = vector.broadcast %cst_102 : f32 to vector<8x128xf32>
    %566 = arith.select %564, %559, %565 : vector<8x128xi1>, vector<8x128xf32>
    %567 = arith.addf %186, %566 : vector<8x128xf32>
    %c0_103 = arith.constant 0 : index
    %c0_104 = arith.constant 0 : index
    %c0_105 = arith.constant 0 : index
    %568 = vector.load %arg3[%c0_103, %c0_104, %c0_105] : memref<1x8x128xf32, #tpu.memory_space<vmem>>, vector<1x8x128xf32>
    %569 = vector.shape_cast %568 : vector<1x8x128xf32> to vector<8x128xf32>
    %570 = vector.shape_cast %567 : vector<8x128xf32> to vector<1x8x128xf32>
    tpu.vector_store %arg3[%c0_103, %c0_104, %c0_105], %570 {strides = array<i32>} : memref<1x8x128xf32, #tpu.memory_space<vmem>>, vector<1x8x128xf32>,
    return
  }
  func.func @transform_0(%arg0: i32) -> i32 {
    %c0_i32 = arith.constant 0 : i32
    %c0_i32_0 = arith.constant 0 : i32
    return %c0_i32 : i32
  }
  func.func @transform_1(%arg0: i32) -> (i32, i32, i32, i32) {
    %c0_i32 = arith.constant 0 : i32
    %c0_i32_0 = arith.constant 0 : i32
    %c0_i32_1 = arith.constant 0 : i32
    %c0_i32_2 = arith.constant 0 : i32
    return %c0_i32, %arg0, %c0_i32_0, %c0_i32_1 : i32, i32, i32, i32
  }
  func.func @transform_2(%arg0: i32) -> (i32, i32, i32) {
    %c0_i32 = arith.constant 0 : i32
    %c0_i32_0 = arith.constant 0 : i32
    %c0_i32_1 = arith.constant 0 : i32
    return %arg0, %c0_i32, %c0_i32_0 : i32, i32, i32
  }
}

</mosaic_0001>

<bundles_post_ra>
// kernel: tpu_custom_call.1
= control target key start
LH: loop header
LB: loop body
LE: loop exit
PB: predicated region body
PF: predicated region fallthrough
CT: control target
= control target key end

     0   :  { %7 = vsyncpa [#allocation5], 0  ;;  %s1278_s0 = inlined_call_operand.hbm [shape: f32[90], index: 0, kind: input, shape index: {}]   ;;  %s1279_s1 = inlined_call_operand.hbm [shape: f32[3,1,8,128], index: 1, kind: input, shape index: {}]   ;;  %s1280_s2 = inlined_call_operand.hbm [shape: f32[1,8,128], index: 2, kind: output, shape index: {}]  }
   0x1   :  { %8 = vsyncpa [#allocation3], 0 }
   0x2   :  { %9 = vsyncpa [#allocation4], 0  ;;  %s811_s11 = scalar_lea.hbm %s1278_s0, 16 }
   0x3   :  { %p812_p0 = scmp.ne.s32.totalorder %s1278_s0, %s811_s11  ;;  %p815_p1 = scmp.lt.u32.totalorder %s811_s11, %s1278_s0 }
   0x5   :  { %p817_p2 = pnand %p815_p1, %p812_p0 }
   0x7   :  { %820 = shalt.err (!%p817_p2)
}
   0x8   :  { %s871_s16 = smov [#allocation2]   ;;  %s872_s19 = smov [#allocation6]  }
   0x9   :  { %17 = dma.hbm_to_smem %s1278_s0, 16, %s871_s16, [#allocation5]  }
   0xa   :  { %s23_s20 = sshll.u32 %s872_s19, 4  ;;  %s821_s23 = scalar_lea.hbm %s1279_s1, 384  ;;  %s24_s20 = int_to_ptr.vmem [resolvable:$true] %s23_s20 }
   0xb   :  { %p822_p3 = scmp.ne.s32.totalorder %s1279_s1, %s821_s23  ;;  %p825_p4 = scmp.lt.u32.totalorder %s821_s23, %s1279_s1 }
   0xd   :  { %p827_p5 = pnand %p825_p4, %p822_p3 }
   0xf   :  { %830 = shalt.err (!%p827_p5)
}
  0x10   :  { %s831_s28 = scalar_lea.vmem %s24_s20, 384  ;;  %p836_p7 = scmp.lt.s32.totalorder %s24_s20, %s24_s20 }
  0x11   :  { %p832_p6 = scmp.ne.s32.totalorder %s24_s20, %s831_s28  ;;  %p837_p8 = scmp.lt.s32.totalorder %s831_s28, %s831_s28 }
  0x13   :  { %p838_p9 = por %p837_p8, %p836_p7 }
  0x15   :  { %p839_p10 = pnand %p838_p9, %p832_p6 }
  0x17   :  { %842 = shalt.err (!%p839_p10)
}
  0x18   :  { %s873_s0 = smov 128   ;;  %s874_s29 = smov 8  }
  0x19   :  { %29 = dma.hbm_to_vmem [thread:$0]  %s1279_s1, 384, %s24_s20, [#allocation3], %s873_s0, %s873_s0, %s874_s29  }
  0x1a   :  { %865 = dma.done.wait [#allocation5], 16  }
  0x1b   :  { %866 = vsyncadd [#allocation5], 4294967280 }
  0x1c   :  { %867 = dma.done.wait [#allocation3], 384  }
  0x1d   :  { %868 = vsyncadd [#allocation3], 4294966912 }
  0x1e   :  { %36 = sfence }
  0x1f   :  { %s37_s4 = sld [smem:[#allocation2]]  ;;  %s623_s5 = sld [smem:[#allocation2 + $0x1]]  ;;  %v925_v0 = vld [vmem:[#allocation6] sm:$0xff]  ;;  %v929_v1 = vld [vmem:[#allocation6 + $0x8] sm:$0xff]  ;;  %v933_v2 = vld [vmem:[#allocation6 + $0x10] sm:$0xff] }
  0x20   :  { %s625_s6 = sld [smem:[#allocation2 + $0x2]]  ;;  %s627_s7 = sld [smem:[#allocation2 + $0x3]] }
  0x21   :  { %s915_s8 = sld [smem:[#allocation2 + $0x4]]  ;;  %s917_s9 = sld [smem:[#allocation2 + $0x5]] }
  0x22   :  { %s919_s10 = sld [smem:[#allocation2 + $0x6]]  ;;  %s921_s11 = sld [smem:[#allocation2 + $0x7]] }
  0x23   :  { %s923_s1 = sld [smem:[#allocation2 + $0x8]]  ;;  %s927_s14 = sld [smem:[#allocation2 + $0x9]] }
  0x24   :  { %s931_s16 = sld [smem:[#allocation2 + $0xa]]  ;;  %s935_s18 = sld [smem:[#allocation2 + $0xb]] }
  0x25   :  { %s622_s12 = sadd.f32 -1e-06, %s37_s4  ;;  %s939_s20 = sld [smem:[#allocation2 + $0xc]] }
  0x26   :  { %s624_s13 = sadd.f32 -1e-06, %s623_s5  ;;  %s943_s22 = sld [smem:[#allocation2 + $0xd]] }
  0x27   :  { %s626_s15 = sadd.f32 -1e-06, %s625_s6  ;;  %v231_v3 = vstv %s622_s12  ;;  %s947_s24 = sld [smem:[#allocation2 + $0xe]] }
  0x28   :  { %s628_s17 = sadd.f32 -1e-06, %s627_s7  ;;  %v232_v4 = vsub.f32 %v925_v0, %v231_v3  ;;  %v233_v5 = vstv %s624_s13  ;;  %s951_s26 = sld [smem:[#allocation2 + $0xf]] }
  0x29   :  { %s630_s19 = sadd.f32 -1e-06, %s915_s8  ;;  %v234_v6 = vsub.f32 %v929_v1, %v233_v5  ;;  %v235_v7 = vstv %s626_s15  ;;  %s955_s28 = sld [smem:[#allocation2 + $0x10]] }
  0x2a   :  { %s632_s21 = sadd.f32 -1e-06, %s917_s9  ;;  %v236_v8 = vsub.f32 %v933_v2, %v235_v7  ;;  %v237_v9 = vmul.f32 %v232_v4, %v232_v4  ;;  %v242_v10 = vstv %s628_s17  ;;  %s959_s29 = sld [smem:[#allocation2 + $0x11]] }
  0x2b   :  { %s634_s23 = sadd.f32 -1e-06, %s919_s10  ;;  %v238_v11 = vmul.f32 %v234_v6, %v234_v6  ;;  %v243_v12 = vsub.f32 %v925_v0, %v242_v10  ;;  %v244_v13 = vstv %s630_s19  ;;  %s963_s3 = sld [smem:[#allocation2 + $0x12]] }
  0x2c   :  { %s636_s25 = sadd.f32 -1e-06, %s921_s11  ;;  %v240_v14 = vmul.f32 %v236_v8, %v236_v8  ;;  %v245_v15 = vsub.f32 %v929_v1, %v244_v13  ;;  %v246_v16 = vstv %s632_s21  ;;  %s967_s5 = sld [smem:[#allocation2 + $0x13]] }
  0x2d   :  { %s638_s27 = sadd.f32 -1e-06, %s923_s1  ;;  %v239_v17 = vadd.f32 %v238_v11, %v237_v9  ;;  %v247_v18 = vsub.f32 %v933_v2, %v246_v16  ;;  %v248_v19 = vmul.f32 %v243_v12, %v243_v12  ;;  %v254_v20 = vstv %s634_s23  ;;  %s971_s7 = sld [smem:[#allocation2 + $0x14]] }
  0x2e   :  { %s640_s0 = sadd.f32 -1e-06, %s927_s14  ;;  %v249_v21 = vmul.f32 %v245_v15, %v245_v15  ;;  %v255_v22 = vsub.f32 %v925_v0, %v254_v20  ;;  %v256_v23 = vstv %s636_s25  ;;  %s975_s9 = sld [smem:[#allocation2 + $0x15]] }
  0x2f   :  { %s642_s30 = sadd.f32 -1e-06, %s931_s16  ;;  %v241_v24 = vadd.f32 %v240_v14, %v239_v17  ;;  %v251_v25 = vmul.f32 %v247_v18, %v247_v18  ;;  %v257_v26 = vsub.f32 %v929_v1, %v256_v23  ;;  %v258_v27 = vstv %s638_s27  ;;  %s979_s11 = sld [smem:[#allocation2 + $0x16]] }
  0x30   :  { %s644_s4 = sadd.f32 -1e-06, %s935_s18  ;;  %v250_v28 = vadd.f32 %v249_v21, %v248_v19  ;;  %v259_v29 = vsub.f32 %v933_v2, %v258_v27  ;;  %v260_v30 = vmul.f32 %v255_v22, %v255_v22  ;;  %v266_v31 = vstv %s640_s0  ;;  %s983_s1 = sld [smem:[#allocation2 + $0x17]] }
  0x31   :  { %s646_s6 = sadd.f32 -1e-06, %s939_s20  ;;  %v261_v32 = vmul.f32 %v257_v26, %v257_v26  ;;  %v267_v33 = vsub.f32 %v925_v0, %v266_v31  ;;  %v268_v34 = vstv %s642_s30  ;;  %s987_s14 = sld [smem:[#allocation2 + $0x18]] }
  0x32   :  { %s648_s8 = sadd.f32 -1e-06, %s943_s22  ;;  %v252_v35 = vadd.f32 %v251_v25, %v250_v28  ;;  %v263_v36 = vmul.f32 %v259_v29, %v259_v29  ;;  %v269_v37 = vsub.f32 %v929_v1, %v268_v34  ;;  %v270_v38 = vstv %s644_s4  ;;  %s991_s16 = sld [smem:[#allocation2 + $0x19]] }
  0x33   :  { %s650_s10 = sadd.f32 -1e-06, %s947_s24  ;;  %v262_v39 = vadd.f32 %v261_v32, %v260_v30  ;;  %v271_v40 = vsub.f32 %v933_v2, %v270_v38  ;;  %v272_v41 = vmul.f32 %v267_v33, %v267_v33  ;;  %v278_v42 = vstv %s646_s6  ;;  %s995_s18 = sld [smem:[#allocation2 + $0x1a]] }
  0x34   :  { %s652_s12 = sadd.f32 -1e-06, %s951_s26  ;;  %v253_v43 = vmin.f32 %v241_v24, %v252_v35  ;;  %v273_v44 = vmul.f32 %v269_v37, %v269_v37  ;;  %v279_v45 = vsub.f32 %v925_v0, %v278_v42  ;;  %v280_v46 = vstv %s648_s8  ;;  %s999_s20 = sld [smem:[#allocation2 + $0x1b]] }
  0x35   :  { %s654_s13 = sadd.f32 -1e-06, %s955_s28  ;;  %v264_v47 = vadd.f32 %v263_v36, %v262_v39  ;;  %v275_v48 = vmul.f32 %v271_v40, %v271_v40  ;;  %v281_v49 = vsub.f32 %v929_v1, %v280_v46  ;;  %v282_v50 = vstv %s650_s10  ;;  %s1003_s22 = sld [smem:[#allocation2 + $0x1c]] }
  0x36   :  { %s656_s15 = sadd.f32 -1e-06, %s959_s29  ;;  %v274_v51 = vadd.f32 %v273_v44, %v272_v41  ;;  %v283_v52 = vsub.f32 %v933_v2, %v282_v50  ;;  %v284_v53 = vmul.f32 %v279_v45, %v279_v45  ;;  %v290_v54 = vstv %s652_s12  ;;  %s1007_s24 = sld [smem:[#allocation2 + $0x1d]] }
  0x37   :  { %s658_s17 = sadd.f32 -1e-06, %s963_s3  ;;  %v265_v55 = vmin.f32 %v253_v43, %v264_v47  ;;  %v285_v56 = vmul.f32 %v281_v49, %v281_v49  ;;  %v291_v57 = vsub.f32 %v925_v0, %v290_v54  ;;  %v292_v58 = vstv %s654_s13  ;;  %s1011_s26 = sld [smem:[#allocation2 + $0x1e]] }
  0x38   :  { %s660_s19 = sadd.f32 -1e-06, %s967_s5  ;;  %v276_v59 = vadd.f32 %v275_v48, %v274_v51  ;;  %v287_v60 = vmul.f32 %v283_v52, %v283_v52  ;;  %v293_v61 = vsub.f32 %v929_v1, %v292_v58  ;;  %v294_v62 = vstv %s656_s15  ;;  %s1015_s28 = sld [smem:[#allocation2 + $0x1f]] }
  0x39   :  { %s662_s21 = sadd.f32 -1e-06, %s971_s7  ;;  %v286_v63 = vadd.f32 %v285_v56, %v284_v53  ;;  %v295_v3 = vsub.f32 %v933_v2, %v294_v62  ;;  %v296_v4 = vmul.f32 %v291_v57, %v291_v57  ;;  %v302_v5 = vstv %s658_s17  ;;  %s1019_s29 = sld [smem:[#allocation2 + $0x20]] }
  0x3a   :  { %s664_s23 = sadd.f32 -1e-06, %s975_s9  ;;  %v277_v6 = vmin.f32 %v265_v55, %v276_v59  ;;  %v297_v7 = vmul.f32 %v293_v61, %v293_v61  ;;  %v303_v8 = vsub.f32 %v925_v0, %v302_v5  ;;  %v304_v9 = vstv %s660_s19  ;;  %s1023_s3 = sld [smem:[#allocation2 + $0x21]] }
  0x3b   :  { %s666_s25 = sadd.f32 -1e-06, %s979_s11  ;;  %v288_v10 = vadd.f32 %v287_v60, %v286_v63  ;;  %v299_v11 = vmul.f32 %v295_v3, %v295_v3  ;;  %v305_v12 = vsub.f32 %v929_v1, %v304_v9  ;;  %v306_v13 = vstv %s662_s21  ;;  %s1027_s5 = sld [smem:[#allocation2 + $0x22]] }
  0x3c   :  { %s668_s27 = sadd.f32 -1e-06, %s983_s1  ;;  %v298_v14 = vadd.f32 %v297_v7, %v296_v4  ;;  %v307_v15 = vsub.f32 %v933_v2, %v306_v13  ;;  %v308_v16 = vmul.f32 %v303_v8, %v303_v8  ;;  %v314_v17 = vstv %s664_s23  ;;  %s1031_s7 = sld [smem:[#allocation2 + $0x23]] }
  0x3d   :  { %s670_s0 = sadd.f32 -1e-06, %s987_s14  ;;  %v289_v18 = vmin.f32 %v277_v6, %v288_v10  ;;  %v309_v19 = vmul.f32 %v305_v12, %v305_v12  ;;  %v315_v20 = vsub.f32 %v925_v0, %v314_v17  ;;  %v316_v21 = vstv %s666_s25  ;;  %s1035_s9 = sld [smem:[#allocation2 + $0x24]] }
  0x3e   :  { %s672_s30 = sadd.f32 -1e-06, %s991_s16  ;;  %v300_v22 = vadd.f32 %v299_v11, %v298_v14  ;;  %v311_v23 = vmul.f32 %v307_v15, %v307_v15  ;;  %v317_v24 = vsub.f32 %v929_v1, %v316_v21  ;;  %v318_v25 = vstv %s668_s27  ;;  %s1039_s11 = sld [smem:[#allocation2 + $0x25]] }
  0x3f   :  { %s674_s4 = sadd.f32 -1e-06, %s995_s18  ;;  %v310_v26 = vadd.f32 %v309_v19, %v308_v16  ;;  %v319_v27 = vsub.f32 %v933_v2, %v318_v25  ;;  %v320_v28 = vmul.f32 %v315_v20, %v315_v20  ;;  %v326_v29 = vstv %s670_s0  ;;  %s1043_s1 = sld [smem:[#allocation2 + $0x26]] }
  0x40   :  { %s676_s6 = sadd.f32 -1e-06, %s999_s20  ;;  %v301_v30 = vmin.f32 %v289_v18, %v300_v22  ;;  %v321_v31 = vmul.f32 %v317_v24, %v317_v24  ;;  %v327_v32 = vsub.f32 %v925_v0, %v326_v29  ;;  %v328_v33 = vstv %s672_s30  ;;  %s1047_s14 = sld [smem:[#allocation2 + $0x27]] }
  0x41   :  { %s678_s8 = sadd.f32 -1e-06, %s1003_s22  ;;  %v312_v34 = vadd.f32 %v311_v23, %v310_v26  ;;  %v323_v35 = vmul.f32 %v319_v27, %v319_v27  ;;  %v329_v36 = vsub.f32 %v929_v1, %v328_v33  ;;  %v330_v37 = vstv %s674_s4  ;;  %s1051_s16 = sld [smem:[#allocation2 + $0x28]] }
  0x42   :  { %s680_s10 = sadd.f32 -1e-06, %s1007_s24  ;;  %v322_v38 = vadd.f32 %v321_v31, %v320_v28  ;;  %v331_v39 = vsub.f32 %v933_v2, %v330_v37  ;;  %v332_v40 = vmul.f32 %v327_v32, %v327_v32  ;;  %v338_v41 = vstv %s676_s6  ;;  %s1055_s18 = sld [smem:[#allocation2 + $0x29]] }
  0x43   :  { %s682_s12 = sadd.f32 -1e-06, %s1011_s26  ;;  %v313_v42 = vmin.f32 %v301_v30, %v312_v34  ;;  %v333_v43 = vmul.f32 %v329_v36, %v329_v36  ;;  %v339_v44 = vsub.f32 %v925_v0, %v338_v41  ;;  %v340_v45 = vstv %s678_s8  ;;  %s1059_s20 = sld [smem:[#allocation2 + $0x2a]] }
  0x44   :  { %s684_s13 = sadd.f32 -1e-06, %s1015_s28  ;;  %v324_v46 = vadd.f32 %v323_v35, %v322_v38  ;;  %v335_v47 = vmul.f32 %v331_v39, %v331_v39  ;;  %v341_v48 = vsub.f32 %v929_v1, %v340_v45  ;;  %v342_v49 = vstv %s680_s10  ;;  %s1063_s22 = sld [smem:[#allocation2 + $0x2b]] }
  0x45   :  { %s686_s15 = sadd.f32 -1e-06, %s1019_s29  ;;  %v334_v50 = vadd.f32 %v333_v43, %v332_v40  ;;  %v343_v51 = vsub.f32 %v933_v2, %v342_v49  ;;  %v344_v52 = vmul.f32 %v339_v44, %v339_v44  ;;  %v350_v53 = vstv %s682_s12  ;;  %s1067_s24 = sld [smem:[#allocation2 + $0x2c]] }
  0x46   :  { %s688_s17 = sadd.f32 -1e-06, %s1023_s3  ;;  %v325_v54 = vmin.f32 %v313_v42, %v324_v46  ;;  %v345_v55 = vmul.f32 %v341_v48, %v341_v48  ;;  %v351_v56 = vsub.f32 %v925_v0, %v350_v53  ;;  %v352_v57 = vstv %s684_s13  ;;  %s1071_s26 = sld [smem:[#allocation2 + $0x2d]] }
  0x47   :  { %s690_s19 = sadd.f32 -1e-06, %s1027_s5  ;;  %v336_v58 = vadd.f32 %v335_v47, %v334_v50  ;;  %v347_v59 = vmul.f32 %v343_v51, %v343_v51  ;;  %v353_v60 = vsub.f32 %v929_v1, %v352_v57  ;;  %v354_v61 = vstv %s686_s15  ;;  %s1075_s28 = sld [smem:[#allocation2 + $0x2e]] }
  0x48   :  { %s692_s21 = sadd.f32 -1e-06, %s1031_s7  ;;  %v346_v62 = vadd.f32 %v345_v55, %v344_v52  ;;  %v355_v63 = vsub.f32 %v933_v2, %v354_v61  ;;  %v356_v3 = vmul.f32 %v351_v56, %v351_v56  ;;  %v362_v4 = vstv %s688_s17  ;;  %s1079_s29 = sld [smem:[#allocation2 + $0x2f]] }
  0x49   :  { %s694_s23 = sadd.f32 -1e-06, %s1035_s9  ;;  %v337_v5 = vmin.f32 %v325_v54, %v336_v58  ;;  %v357_v6 = vmul.f32 %v353_v60, %v353_v60  ;;  %v363_v7 = vsub.f32 %v925_v0, %v362_v4  ;;  %v364_v8 = vstv %s690_s19  ;;  %s1083_s3 = sld [smem:[#allocation2 + $0x30]] }
  0x4a   :  { %s696_s25 = sadd.f32 -1e-06, %s1039_s11  ;;  %v348_v9 = vadd.f32 %v347_v59, %v346_v62  ;;  %v359_v10 = vmul.f32 %v355_v63, %v355_v63  ;;  %v365_v11 = vsub.f32 %v929_v1, %v364_v8  ;;  %v366_v12 = vstv %s692_s21  ;;  %s1087_s5 = sld [smem:[#allocation2 + $0x31]] }
  0x4b   :  { %s698_s27 = sadd.f32 -1e-06, %s1043_s1  ;;  %v358_v13 = vadd.f32 %v357_v6, %v356_v3  ;;  %v367_v14 = vsub.f32 %v933_v2, %v366_v12  ;;  %v368_v15 = vmul.f32 %v363_v7, %v363_v7  ;;  %v374_v16 = vstv %s694_s23  ;;  %s1091_s7 = sld [smem:[#allocation2 + $0x32]] }
  0x4c   :  { %s700_s0 = sadd.f32 -1e-06, %s1047_s14  ;;  %v349_v17 = vmin.f32 %v337_v5, %v348_v9  ;;  %v369_v18 = vmul.f32 %v365_v11, %v365_v11  ;;  %v375_v19 = vsub.f32 %v925_v0, %v374_v16  ;;  %v376_v20 = vstv %s696_s25  ;;  %s1095_s9 = sld [smem:[#allocation2 + $0x33]] }
  0x4d   :  { %s702_s30 = sadd.f32 -1e-06, %s1051_s16  ;;  %v360_v21 = vadd.f32 %v359_v10, %v358_v13  ;;  %v371_v22 = vmul.f32 %v367_v14, %v367_v14  ;;  %v377_v23 = vsub.f32 %v929_v1, %v376_v20  ;;  %v378_v24 = vstv %s698_s27  ;;  %s1099_s11 = sld [smem:[#allocation2 + $0x34]] }
  0x4e   :  { %s704_s4 = sadd.f32 -1e-06, %s1055_s18  ;;  %v370_v25 = vadd.f32 %v369_v18, %v368_v15  ;;  %v379_v26 = vsub.f32 %v933_v2, %v378_v24  ;;  %v380_v27 = vmul.f32 %v375_v19, %v375_v19  ;;  %v386_v28 = vstv %s700_s0  ;;  %s1103_s1 = sld [smem:[#allocation2 + $0x35]] }
  0x4f   :  { %s706_s6 = sadd.f32 -1e-06, %s1059_s20  ;;  %v361_v29 = vmin.f32 %v349_v17, %v360_v21  ;;  %v381_v30 = vmul.f32 %v377_v23, %v377_v23  ;;  %v387_v31 = vsub.f32 %v925_v0, %v386_v28  ;;  %v388_v32 = vstv %s702_s30  ;;  %s1107_s14 = sld [smem:[#allocation2 + $0x36]] }
  0x50   :  { %s708_s8 = sadd.f32 -1e-06, %s1063_s22  ;;  %v372_v33 = vadd.f32 %v371_v22, %v370_v25  ;;  %v383_v34 = vmul.f32 %v379_v26, %v379_v26  ;;  %v389_v35 = vsub.f32 %v929_v1, %v388_v32  ;;  %v390_v36 = vstv %s704_s4  ;;  %s1111_s16 = sld [smem:[#allocation2 + $0x37]] }
  0x51   :  { %s710_s10 = sadd.f32 -1e-06, %s1067_s24  ;;  %v382_v37 = vadd.f32 %v381_v30, %v380_v27  ;;  %v391_v38 = vsub.f32 %v933_v2, %v390_v36  ;;  %v392_v39 = vmul.f32 %v387_v31, %v387_v31  ;;  %v398_v40 = vstv %s706_s6  ;;  %s1115_s18 = sld [smem:[#allocation2 + $0x38]] }
  0x52   :  { %s712_s12 = sadd.f32 -1e-06, %s1071_s26  ;;  %v373_v41 = vmin.f32 %v361_v29, %v372_v33  ;;  %v393_v42 = vmul.f32 %v389_v35, %v389_v35  ;;  %v399_v43 = vsub.f32 %v925_v0, %v398_v40  ;;  %v400_v44 = vstv %s708_s8  ;;  %s1119_s20 = sld [smem:[#allocation2 + $0x39]] }
  0x53   :  { %s714_s13 = sadd.f32 -1e-06, %s1075_s28  ;;  %v384_v45 = vadd.f32 %v383_v34, %v382_v37  ;;  %v395_v46 = vmul.f32 %v391_v38, %v391_v38  ;;  %v401_v47 = vsub.f32 %v929_v1, %v400_v44  ;;  %v402_v48 = vstv %s710_s10  ;;  %s1123_s22 = sld [smem:[#allocation2 + $0x3a]] }
  0x54   :  { %s716_s15 = sadd.f32 -1e-06, %s1079_s29  ;;  %v394_v49 = vadd.f32 %v393_v42, %v392_v39  ;;  %v403_v50 = vsub.f32 %v933_v2, %v402_v48  ;;  %v404_v51 = vmul.f32 %v399_v43, %v399_v43  ;;  %v410_v52 = vstv %s712_s12  ;;  %s1127_s24 = sld [smem:[#allocation2 + $0x3b]] }
  0x55   :  { %s718_s17 = sadd.f32 -1e-06, %s1083_s3  ;;  %v385_v53 = vmin.f32 %v373_v41, %v384_v45  ;;  %v405_v54 = vmul.f32 %v401_v47, %v401_v47  ;;  %v411_v55 = vsub.f32 %v925_v0, %v410_v52  ;;  %v412_v56 = vstv %s714_s13  ;;  %s1131_s26 = sld [smem:[#allocation2 + $0x3c]] }
  0x56   :  { %s720_s19 = sadd.f32 -1e-06, %s1087_s5  ;;  %v396_v57 = vadd.f32 %v395_v46, %v394_v49  ;;  %v407_v58 = vmul.f32 %v403_v50, %v403_v50  ;;  %v413_v59 = vsub.f32 %v929_v1, %v412_v56  ;;  %v414_v60 = vstv %s716_s15  ;;  %s1135_s28 = sld [smem:[#allocation2 + $0x3d]] }
  0x57   :  { %s722_s21 = sadd.f32 -1e-06, %s1091_s7  ;;  %v406_v61 = vadd.f32 %v405_v54, %v404_v51  ;;  %v415_v62 = vsub.f32 %v933_v2, %v414_v60  ;;  %v416_v63 = vmul.f32 %v411_v55, %v411_v55  ;;  %v422_v3 = vstv %s718_s17  ;;  %s1139_s29 = sld [smem:[#allocation2 + $0x3e]] }
  0x58   :  { %s724_s23 = sadd.f32 -1e-06, %s1095_s9  ;;  %v397_v4 = vmin.f32 %v385_v53, %v396_v57  ;;  %v417_v5 = vmul.f32 %v413_v59, %v413_v59  ;;  %v423_v6 = vsub.f32 %v925_v0, %v422_v3  ;;  %v424_v7 = vstv %s720_s19  ;;  %s1143_s3 = sld [smem:[#allocation2 + $0x3f]] }
  0x59   :  { %s726_s25 = sadd.f32 -1e-06, %s1099_s11  ;;  %v408_v8 = vadd.f32 %v407_v58, %v406_v61  ;;  %v419_v9 = vmul.f32 %v415_v62, %v415_v62  ;;  %v425_v10 = vsub.f32 %v929_v1, %v424_v7  ;;  %v426_v11 = vstv %s722_s21  ;;  %s1147_s5 = sld [smem:[#allocation2 + $0x40]] }
  0x5a   :  { %s728_s27 = sadd.f32 -1e-06, %s1103_s1  ;;  %v418_v12 = vadd.f32 %v417_v5, %v416_v63  ;;  %v427_v13 = vsub.f32 %v933_v2, %v426_v11  ;;  %v428_v14 = vmul.f32 %v423_v6, %v423_v6  ;;  %v434_v15 = vstv %s724_s23  ;;  %s1151_s7 = sld [smem:[#allocation2 + $0x41]] }
  0x5b   :  { %s730_s0 = sadd.f32 -1e-06, %s1107_s14  ;;  %v409_v16 = vmin.f32 %v397_v4, %v408_v8  ;;  %v429_v17 = vmul.f32 %v425_v10, %v425_v10  ;;  %v435_v18 = vsub.f32 %v925_v0, %v434_v15  ;;  %v436_v19 = vstv %s726_s25  ;;  %s1155_s9 = sld [smem:[#allocation2 + $0x42]] }
  0x5c   :  { %s732_s30 = sadd.f32 -1e-06, %s1111_s16  ;;  %v420_v20 = vadd.f32 %v419_v9, %v418_v12  ;;  %v431_v21 = vmul.f32 %v427_v13, %v427_v13  ;;  %v437_v22 = vsub.f32 %v929_v1, %v436_v19  ;;  %v438_v23 = vstv %s728_s27  ;;  %s1159_s11 = sld [smem:[#allocation2 + $0x43]] }
  0x5d   :  { %s734_s4 = sadd.f32 -1e-06, %s1115_s18  ;;  %v430_v24 = vadd.f32 %v429_v17, %v428_v14  ;;  %v439_v25 = vsub.f32 %v933_v2, %v438_v23  ;;  %v440_v26 = vmul.f32 %v435_v18, %v435_v18  ;;  %v446_v27 = vstv %s730_s0  ;;  %s1163_s1 = sld [smem:[#allocation2 + $0x44]] }
  0x5e   :  { %s736_s6 = sadd.f32 -1e-06, %s1119_s20  ;;  %v421_v28 = vmin.f32 %v409_v16, %v420_v20  ;;  %v441_v29 = vmul.f32 %v437_v22, %v437_v22  ;;  %v447_v30 = vsub.f32 %v925_v0, %v446_v27  ;;  %v448_v31 = vstv %s732_s30  ;;  %s1167_s14 = sld [smem:[#allocation2 + $0x45]] }
  0x5f   :  { %s738_s8 = sadd.f32 -1e-06, %s1123_s22  ;;  %v432_v32 = vadd.f32 %v431_v21, %v430_v24  ;;  %v443_v33 = vmul.f32 %v439_v25, %v439_v25  ;;  %v449_v34 = vsub.f32 %v929_v1, %v448_v31  ;;  %v450_v35 = vstv %s734_s4  ;;  %s1171_s16 = sld [smem:[#allocation2 + $0x46]] }
  0x60   :  { %s740_s10 = sadd.f32 -1e-06, %s1127_s24  ;;  %v442_v36 = vadd.f32 %v441_v29, %v440_v26  ;;  %v451_v37 = vsub.f32 %v933_v2, %v450_v35  ;;  %v452_v38 = vmul.f32 %v447_v30, %v447_v30  ;;  %v458_v39 = vstv %s736_s6  ;;  %s1175_s18 = sld [smem:[#allocation2 + $0x47]] }
  0x61   :  { %s742_s12 = sadd.f32 -1e-06, %s1131_s26  ;;  %v433_v40 = vmin.f32 %v421_v28, %v432_v32  ;;  %v453_v41 = vmul.f32 %v449_v34, %v449_v34  ;;  %v459_v42 = vsub.f32 %v925_v0, %v458_v39  ;;  %v460_v43 = vstv %s738_s8  ;;  %s1179_s20 = sld [smem:[#allocation2 + $0x48]] }
  0x62   :  { %s744_s13 = sadd.f32 -1e-06, %s1135_s28  ;;  %v444_v44 = vadd.f32 %v443_v33, %v442_v36  ;;  %v455_v45 = vmul.f32 %v451_v37, %v451_v37  ;;  %v461_v46 = vsub.f32 %v929_v1, %v460_v43  ;;  %v462_v47 = vstv %s740_s10  ;;  %s1183_s22 = sld [smem:[#allocation2 + $0x49]] }
  0x63   :  { %s746_s15 = sadd.f32 -1e-06, %s1139_s29  ;;  %v454_v48 = vadd.f32 %v453_v41, %v452_v38  ;;  %v463_v49 = vsub.f32 %v933_v2, %v462_v47  ;;  %v464_v50 = vmul.f32 %v459_v42, %v459_v42  ;;  %v470_v51 = vstv %s742_s12  ;;  %s1187_s24 = sld [smem:[#allocation2 + $0x4a]] }
  0x64   :  { %s748_s17 = sadd.f32 -1e-06, %s1143_s3  ;;  %v445_v52 = vmin.f32 %v433_v40, %v444_v44  ;;  %v465_v53 = vmul.f32 %v461_v46, %v461_v46  ;;  %v471_v54 = vsub.f32 %v925_v0, %v470_v51  ;;  %v472_v55 = vstv %s744_s13  ;;  %s1191_s26 = sld [smem:[#allocation2 + $0x4b]] }
  0x65   :  { %s750_s19 = sadd.f32 -1e-06, %s1147_s5  ;;  %v456_v56 = vadd.f32 %v455_v45, %v454_v48  ;;  %v467_v57 = vmul.f32 %v463_v49, %v463_v49  ;;  %v473_v58 = vsub.f32 %v929_v1, %v472_v55  ;;  %v474_v59 = vstv %s746_s15  ;;  %s1195_s28 = sld [smem:[#allocation2 + $0x4c]] }
  0x66   :  { %s752_s21 = sadd.f32 -1e-06, %s1151_s7  ;;  %v466_v60 = vadd.f32 %v465_v53, %v464_v50  ;;  %v475_v61 = vsub.f32 %v933_v2, %v474_v59  ;;  %v476_v62 = vmul.f32 %v471_v54, %v471_v54  ;;  %v482_v63 = vstv %s748_s17  ;;  %s1199_s29 = sld [smem:[#allocation2 + $0x4d]] }
  0x67   :  { %s754_s23 = sadd.f32 -1e-06, %s1155_s9  ;;  %v457_v3 = vmin.f32 %v445_v52, %v456_v56  ;;  %v477_v4 = vmul.f32 %v473_v58, %v473_v58  ;;  %v483_v5 = vsub.f32 %v925_v0, %v482_v63  ;;  %v484_v6 = vstv %s750_s19  ;;  %s1203_s3 = sld [smem:[#allocation2 + $0x4e]] }
  0x68   :  { %s756_s25 = sadd.f32 -1e-06, %s1159_s11  ;;  %v468_v7 = vadd.f32 %v467_v57, %v466_v60  ;;  %v479_v8 = vmul.f32 %v475_v61, %v475_v61  ;;  %v485_v9 = vsub.f32 %v929_v1, %v484_v6  ;;  %v486_v10 = vstv %s752_s21  ;;  %s1207_s5 = sld [smem:[#allocation2 + $0x4f]] }
  0x69   :  { %s758_s27 = sadd.f32 -1e-06, %s1163_s1  ;;  %v478_v11 = vadd.f32 %v477_v4, %v476_v62  ;;  %v487_v12 = vsub.f32 %v933_v2, %v486_v10  ;;  %v488_v13 = vmul.f32 %v483_v5, %v483_v5  ;;  %v494_v14 = vstv %s754_s23  ;;  %s1211_s7 = sld [smem:[#allocation2 + $0x50]] }
  0x6a   :  { %s760_s0 = sadd.f32 -1e-06, %s1167_s14  ;;  %v469_v15 = vmin.f32 %v457_v3, %v468_v7  ;;  %v489_v16 = vmul.f32 %v485_v9, %v485_v9  ;;  %v495_v17 = vsub.f32 %v925_v0, %v494_v14  ;;  %v496_v18 = vstv %s756_s25  ;;  %s1215_s9 = sld [smem:[#allocation2 + $0x51]] }
  0x6b   :  { %s762_s30 = sadd.f32 -1e-06, %s1171_s16  ;;  %v480_v19 = vadd.f32 %v479_v8, %v478_v11  ;;  %v491_v20 = vmul.f32 %v487_v12, %v487_v12  ;;  %v497_v21 = vsub.f32 %v929_v1, %v496_v18  ;;  %v498_v22 = vstv %s758_s27  ;;  %s1219_s11 = sld [smem:[#allocation2 + $0x52]] }
  0x6c   :  { %s764_s4 = sadd.f32 -1e-06, %s1175_s18  ;;  %v490_v23 = vadd.f32 %v489_v16, %v488_v13  ;;  %v499_v24 = vsub.f32 %v933_v2, %v498_v22  ;;  %v500_v25 = vmul.f32 %v495_v17, %v495_v17  ;;  %v506_v26 = vstv %s760_s0  ;;  %s1223_s1 = sld [smem:[#allocation2 + $0x53]] }
  0x6d   :  { %s766_s6 = sadd.f32 -1e-06, %s1179_s20  ;;  %v481_v27 = vmin.f32 %v469_v15, %v480_v19  ;;  %v501_v28 = vmul.f32 %v497_v21, %v497_v21  ;;  %v507_v29 = vsub.f32 %v925_v0, %v506_v26  ;;  %v508_v30 = vstv %s762_s30  ;;  %s1227_s14 = sld [smem:[#allocation2 + $0x54]] }
  0x6e   :  { %s768_s8 = sadd.f32 -1e-06, %s1183_s22  ;;  %v492_v31 = vadd.f32 %v491_v20, %v490_v23  ;;  %v503_v32 = vmul.f32 %v499_v24, %v499_v24  ;;  %v509_v33 = vsub.f32 %v929_v1, %v508_v30  ;;  %v510_v34 = vstv %s764_s4  ;;  %s1231_s16 = sld [smem:[#allocation2 + $0x55]] }
  0x6f   :  { %s770_s10 = sadd.f32 -1e-06, %s1187_s24  ;;  %v502_v35 = vadd.f32 %v501_v28, %v500_v25  ;;  %v511_v36 = vsub.f32 %v933_v2, %v510_v34  ;;  %v512_v37 = vmul.f32 %v507_v29, %v507_v29  ;;  %v518_v38 = vstv %s766_s6  ;;  %s1235_s18 = sld [smem:[#allocation2 + $0x56]] }
  0x70   :  { %s772_s12 = sadd.f32 -1e-06, %s1191_s26  ;;  %v493_v39 = vmin.f32 %v481_v27, %v492_v31  ;;  %v513_v40 = vmul.f32 %v509_v33, %v509_v33  ;;  %v519_v41 = vsub.f32 %v925_v0, %v518_v38  ;;  %v520_v42 = vstv %s768_s8  ;;  %s1239_s20 = sld [smem:[#allocation2 + $0x57]] }
  0x71   :  { %s774_s13 = sadd.f32 -1e-06, %s1195_s28  ;;  %v504_v43 = vadd.f32 %v503_v32, %v502_v35  ;;  %v515_v44 = vmul.f32 %v511_v36, %v511_v36  ;;  %v521_v45 = vsub.f32 %v929_v1, %v520_v42  ;;  %v522_v46 = vstv %s770_s10  ;;  %s1243_s22 = sld [smem:[#allocation2 + $0x58]] }
  0x72   :  { %s776_s15 = sadd.f32 -1e-06, %s1199_s29  ;;  %v514_v47 = vadd.f32 %v513_v40, %v512_v37  ;;  %v523_v48 = vsub.f32 %v933_v2, %v522_v46  ;;  %v524_v49 = vmul.f32 %v519_v41, %v519_v41  ;;  %v530_v50 = vstv %s772_s12  ;;  %s1247_s24 = sld [smem:[#allocation2 + $0x59]]  ;;  %v808_v40 = vld [vmem:[#allocation6] sm:$0xff] }
  0x73   :  { %s778_s17 = sadd.f32 -1e-06, %s1203_s3  ;;  %v505_v51 = vmin.f32 %v493_v39, %v504_v43  ;;  %v525_v52 = vmul.f32 %v521_v45, %v521_v45  ;;  %v531_v53 = vsub.f32 %v925_v0, %v530_v50  ;;  %v532_v54 = vstv %s774_s13  ;;  %s875_s4 = smov [#allocation7]  }
  0x74   :  { %s780_s19 = sadd.f32 -1e-06, %s1207_s5  ;;  %v516_v55 = vadd.f32 %v515_v44, %v514_v47  ;;  %v527_v56 = vmul.f32 %v523_v48, %v523_v48  ;;  %v533_v57 = vsub.f32 %v929_v1, %v532_v54  ;;  %v534_v58 = vstv %s776_s15  ;;  %v809_v44 = vld [vmem:[#allocation6 + $0x8] sm:$0xff]  ;;  %v810_v48 = vld [vmem:[#allocation6 + $0x10] sm:$0xff]  ;;  %s610_s5 = sshll.u32 %s875_s4, 4  ;;  %s611_s5 = int_to_ptr.vmem [resolvable:$true] %s610_s5 }
  0x75   :  { %s782_s21 = sadd.f32 -1e-06, %s1211_s7  ;;  %v526_v59 = vadd.f32 %v525_v52, %v524_v49  ;;  %v535_v60 = vsub.f32 %v933_v2, %v534_v58  ;;  %v536_v61 = vmul.f32 %v531_v53, %v531_v53  ;;  %v542_v62 = vstv %s778_s17  ;;  %s843_s6 = scalar_lea.vmem %s611_s5, 128 }
  0x76   :  { %s784_s23 = sadd.f32 -1e-06, %s1215_s9  ;;  %v517_v63 = vmin.f32 %v505_v51, %v516_v55  ;;  %v537_v3 = vmul.f32 %v533_v57, %v533_v57  ;;  %v543_v4 = vsub.f32 %v925_v0, %v542_v62  ;;  %v544_v5 = vstv %s780_s19  ;;  %p844_p11 = scmp.ne.s32.totalorder %s611_s5, %s843_s6 }
  0x77   :  { %s786_s25 = sadd.f32 -1e-06, %s1219_s11  ;;  %v528_v6 = vadd.f32 %v527_v56, %v526_v59  ;;  %v539_v7 = vmul.f32 %v535_v60, %v535_v60  ;;  %v545_v8 = vsub.f32 %v929_v1, %v544_v5  ;;  %v546_v9 = vstv %s782_s21  ;;  %p848_p12 = scmp.lt.s32.totalorder %s611_s5, %s611_s5 }
  0x78   :  { %s788_s26 = sadd.f32 -1e-06, %s1223_s1  ;;  %v538_v10 = vadd.f32 %v537_v3, %v536_v61  ;;  %v547_v11 = vsub.f32 %v933_v2, %v546_v9  ;;  %v548_v12 = vmul.f32 %v543_v4, %v543_v4  ;;  %v554_v13 = vstv %s784_s23  ;;  %p849_p13 = scmp.lt.s32.totalorder %s843_s6, %s843_s6 }
  0x79   :  { %s790_s27 = sadd.f32 -1e-06, %s1227_s14  ;;  %v529_v14 = vmin.f32 %v517_v63, %v528_v6  ;;  %v549_v15 = vmul.f32 %v545_v8, %v545_v8  ;;  %v555_v16 = vsub.f32 %v925_v0, %v554_v13  ;;  %v556_v17 = vstv %s786_s25 }
  0x7a   :  { %s792_s28 = sadd.f32 -1e-06, %s1231_s16  ;;  %v540_v18 = vadd.f32 %v539_v7, %v538_v10  ;;  %v551_v19 = vmul.f32 %v547_v11, %v547_v11  ;;  %v557_v20 = vsub.f32 %v929_v1, %v556_v17  ;;  %v558_v21 = vstv %s788_s26  ;;  %p850_p0 = por %p849_p13, %p848_p12 }
  0x7b   :  { %s794_s0 = sadd.f32 -1e-06, %s1235_s18  ;;  %v550_v22 = vadd.f32 %v549_v15, %v548_v12  ;;  %v559_v23 = vsub.f32 %v933_v2, %v558_v21  ;;  %v560_v24 = vmul.f32 %v555_v16, %v555_v16  ;;  %v566_v25 = vstv %s790_s27 }
  0x7c   :  { %s796_s29 = sadd.f32 -1e-06, %s1239_s20  ;;  %v541_v26 = vmin.f32 %v529_v14, %v540_v18  ;;  %v561_v27 = vmul.f32 %v557_v20, %v557_v20  ;;  %v567_v28 = vsub.f32 %v925_v0, %v566_v25  ;;  %v568_v29 = vstv %s792_s28  ;;  %p851_p1 = pnand %p850_p0, %p844_p11 }
  0x7d   :  { %s798_s30 = sadd.f32 -1e-06, %s1243_s22  ;;  %v552_v30 = vadd.f32 %v551_v19, %v550_v22  ;;  %v563_v31 = vmul.f32 %v559_v23, %v559_v23  ;;  %v569_v32 = vsub.f32 %v929_v1, %v568_v29  ;;  %v570_v33 = vstv %s794_s0 }
  0x7e   :  { %s800_s3 = sadd.f32 -1e-06, %s1247_s24  ;;  %v562_v34 = vadd.f32 %v561_v27, %v560_v24  ;;  %v571_v35 = vsub.f32 %v933_v2, %v570_v33  ;;  %v572_v36 = vmul.f32 %v567_v28, %v567_v28  ;;  %v578_v37 = vstv %s796_s29 }
  0x7f   :  { %v553_v38 = vmin.f32 %v541_v26, %v552_v30  ;;  %v573_v39 = vmul.f32 %v569_v32, %v569_v32  ;;  %v579_v41 = vsub.f32 %v808_v40, %v578_v37  ;;  %v580_v42 = vstv %s798_s30 }
  0x80   :  { %v564_v43 = vadd.f32 %v563_v31, %v562_v34  ;;  %v575_v0 = vmul.f32 %v571_v35, %v571_v35  ;;  %v581_v45 = vsub.f32 %v809_v44, %v580_v42  ;;  %v582_v46 = vstv %s800_s3 }
  0x81   :  { %v574_v47 = vadd.f32 %v573_v39, %v572_v36  ;;  %v583_v1 = vsub.f32 %v810_v48, %v582_v46  ;;  %v584_v49 = vmul.f32 %v579_v41, %v579_v41  ;;  %v217_v56 = vlaneseq }
  0x82   :  { %v565_v50 = vmin.f32 %v553_v38, %v564_v43  ;;  %v585_v51 = vmul.f32 %v581_v45, %v581_v45 }
  0x83   :  { %v576_v52 = vadd.f32 %v575_v0, %v574_v47  ;;  %v587_v2 = vmul.f32 %v583_v1, %v583_v1  ;;  %v218_v59 = vshrl.u32 %v217_v56, 7  ;;  %v220_v60 = vand.u32 127, %v217_v56 }
  0x84   :  { %v586_v53 = vadd.f32 %v585_v51, %v584_v49 }
  0x85   :  { %v577_v54 = vmin.f32 %v565_v50, %v576_v52  ;;  %v221_v61 = vmul.u32 128, %v218_v59 }
  0x86   :  { %v588_v55 = vadd.f32 %v587_v2, %v586_v53 }
  0x87   :  { %v222_v62 = vadd.s32 %v221_v61, %v220_v60 }
  0x88   :  { %v589_v57 = vmin.f32 %v577_v54, %v588_v55 }
  0x89   :  { %vm600_vm2 = vcmp.lt.s32.totalorder %v222_v62, 256 }
  0x8a   :  { %v590_v58 = vadd.f32 1e-06, %v589_v57 }
  0x8c   :  { %806 = vrsqrt.f32 %v590_v58  ;;  %vm593_vm0 = vcmp.eq.f32.partialorder %v590_v58, inf  ;;  %v596_v3 = vand.u32 2147483648, %v590_v58  ;;  %vm595_vm1 = vcmp.eq.f32.partialorder %v590_v58, 0.0 }
  0x96   :  { %v807_v63 = vpop.eup %806 }
  0x97   :  { %v592_v4 = vmul.f32 %v807_v63, %v590_v58 }
  0x99   :  { %v594_v5 = vsel %vm593_vm0, %v590_v58, %v592_v4 }
  0x9a   :  { %v597_v6 = vsel %vm595_vm1, %v596_v3, %v594_v5 }
  0x9b   :  { %v601_v7 = vsel %vm600_vm2, %v597_v6, 0.0 }
  0x9c   :  { %603 = vst [vmem:[#allocation7] sm:$0xff] %v601_v7 }
  0x9d   :  { %854 = shalt.err (!%p851_p1)
}
  0x9e   :  { %s855_s9 = scalar_lea.hbm %s1280_s2, 128 }
  0x9f   :  { %p856_p2 = scmp.ne.s32.totalorder %s1280_s2, %s855_s9  ;;  %p859_p3 = scmp.lt.u32.totalorder %s855_s9, %s1280_s2 }
  0xa1   :  { %p861_p4 = pnand %p859_p3, %p856_p2 }
  0xa3   :  { %864 = shalt.err (!%p861_p4)
}
  0xa4   :  { %613 = dma.vmem_to_hbm [thread:$0]  %s611_s5, 128, %s1280_s2, [#allocation4]  }
  0xa5   :  { %869 = dma.done.wait [#allocation4], 128  }
  0xa6   :  { %870 = vsyncadd [#allocation4], 4294967168 }
  0xa7   :  { %617 = vsyncpa [#allocation3], 1 }
  0xa8   :  { %618 = vsyncpa [#allocation4], 1 }
  0xa9   :  { %619 = vsyncpa [#allocation5], 1 }

</bundles_post_ra>
